<compile_context>
chip_gen: v7x
topology: tpu7x:2x2x1
jax: 0.10.0
libtpu: 0.0.40
codegen_flags: <defaults>
</compile_context>

<pallas_src>
import jax
import jax.numpy as jnp
from jax import lax
from jax.experimental import pallas as pl
from jax.experimental.pallas import tpu as pltpu

# ------------------------- configuration (small, deterministic) ----------------
B = 2              # batch
H = 16             # image height
W = 16             # image width
HW = H * W
LOG2W = 4          # W == 16
CH = 8             # hidden channels of the diff network
KSTEPS = 4         # scaling-and-squaring steps
LAMBDA_JACOBIAN = 0.5
LAMBDA_SMOOTH = 0.1
MULTIPLIER = 1.0


# =========================== fused forward kernel ==============================
def _fused_kernel(inp_ref, w1_ref, b1_ref, w2_ref, g_ref, unflat_ref, out_ref):
    """Whole forward pass for one batch element; lane-dense (C, HW) layout."""
    inp = inp_ref[0]                                     # (2, HW): [moving; fixed]
    mov = inp[0:1, :]
    fix = inp[1:2, :]

    # ---- flat-index helpers (p = row*W + col lives on the lane axis) ----------
    p_i = lax.broadcasted_iota(jnp.int32, (1, HW), 1)
    col_i = lax.bitwise_and(p_i, W - 1)                  # p %  W
    row_i = lax.shift_right_logical(p_i, LOG2W)          # p // W
    col_f = col_i.astype(jnp.float32)
    row_f = row_i.astype(jnp.float32)

    def shift(x, off):
        """y[:, p] = x[:, (p + off) mod HW]  (static off; XLU lane rotation)."""
        off = off % HW
        if off == 0:
            return x
        return pltpu.roll(x, HW - off, axis=1)           # == jnp.roll(x, -off)

    # validity masks for the 3x3 neighbourhood (zero-padding semantics),
    # factored into row/col validity; identity factors skipped entirely.
    okx = {-1: (col_i >= 1).astype(jnp.float32),
           0: None,
           1: (col_i <= W - 2).astype(jnp.float32)}
    oky = {-1: (row_i >= 1).astype(jnp.float32),
           0: None,
           1: (row_i <= H - 2).astype(jnp.float32)}
    masks = {}
    for dy in (-1, 0, 1):
        for dx in (-1, 0, 1):
            mx, my = okx[dx], oky[dy]
            if mx is None:
                masks[(dy, dx)] = my
            elif my is None:
                masks[(dy, dx)] = mx
            else:
                masks[(dy, dx)] = mx * my                # None for (0,0)

    def im2col(x):
        """(C, HW) -> (9*C, HW); row order (k = (dy+1)*3 + (dx+1), channel)."""
        rows = []
        for dy in (-1, 0, 1):
            for dx in (-1, 0, 1):
                r = shift(x, dy * W + dx)
                m = masks[(dy, dx)]
                rows.append(r if m is None else m * r)
        return jnp.concatenate(rows, axis=0)

    # ---- diff network: g(A,B) = N[A,B] - N[B,A]  (2-layer 3x3 conv net) -------
    x1 = im2col(inp)                                                   # (18, HW)
    h_all = jnp.maximum(
        jnp.dot(w1_ref[...], x1, preferred_element_type=jnp.float32)
        + b1_ref[...], 0.0)                                            # (2*CH, HW)
    hdiff = h_all[:CH, :] - h_all[CH:, :]                              # (CH, HW)
    diff = jnp.dot(w2_ref[...], im2col(hdiff),                         # (2, HW)
                   preferred_element_type=jnp.float32)
    # layer-2 bias cancels in N[A,B] - N[B,A]

    # similarity loss of the diff network: sum((mov - fix)^2)
    dimg = mov - fix
    mse_sum = jnp.sum(dimg * dimg, keepdims=True)                      # (1, 1)

    # ---- .smooth().mul(multiplier) + 1/2^K exp pre-scale, all folded into G ---
    # u0 = (multiplier / 2^K) * GaussianBlur3x3(diff), exact (zero-padded border)
    u = jnp.dot(g_ref[...], im2col(diff),
                preferred_element_type=jnp.float32)                    # (2, HW)

    # ---- separable bilinear sampling machinery ---------------------------------
    sub_h_i = lax.broadcasted_iota(jnp.int32, (H, HW), 0)
    sub_w_i = lax.broadcasted_iota(jnp.int32, (W, HW), 0)
    sub_h = sub_h_i.astype(jnp.float32)
    sub_w = sub_w_i.astype(jnp.float32)
    grow = (sub_h_i == row_i).astype(jnp.float32)                      # (H, HW)
    unflat = unflat_ref[...]                                           # (HW, W)

    def unflatten_stack(vs):
        """Stack n flat (1,HW) fields -> one (n*H, W) matrix via a single matmul."""
        rows = jnp.concatenate([grow * v for v in vs], axis=0)         # (n*H, HW)
        return jnp.dot(rows, unflat, preferred_element_type=jnp.float32)

    def sample_stack(fstack, uy, ux, n):
        """Bilinear-sample n stacked (H,W) fields at (row + uy, col + ux)."""
        y = jnp.clip(row_f + uy, 0.0, H - 1.0)                         # (1, HW)
        x = jnp.clip(col_f + ux, 0.0, W - 1.0)
        ry = jnp.maximum(1.0 - jnp.abs(sub_h - y), 0.0)                # (H, HW)
        cx = jnp.maximum(1.0 - jnp.abs(sub_w - x), 0.0)                # (W, HW)
        colint = jnp.dot(fstack, cx, preferred_element_type=jnp.float32)  # (n*H, HW)
        return [jnp.sum(ry * colint[i * H:(i + 1) * H, :], axis=0, keepdims=True)
                for i in range(n)]

    # ---- .exp(): scaling and squaring  u <- u(x) + u(x + u(x)) -----------------
    def ss_body(_, uc):
        uy = uc[0:1, :]
        ux = uc[1:2, :]
        fstack = unflatten_stack([uy, ux])                             # (2H, W)
        s_y, s_x = sample_stack(fstack, uy, ux, 2)
        return uc + jnp.concatenate([s_y, s_x], axis=0)

    u = lax.fori_loop(0, KSTEPS, ss_body, u, unroll=True)              # (2, HW)

    # ---- warp the moving image with the final displacement field ---------------
    (warped,) = sample_stack(unflatten_stack([mov]), u[0:1, :], u[1:2, :], 1)

    # ---- field losses (forward differences via lane rotations + masks) ---------
    colmask = (col_i < (W - 1)).astype(jnp.float32)                    # (1, HW)
    rowmask = (row_i < (H - 1)).astype(jnp.float32)
    dudx = colmask * (shift(u, 1) - u)                                 # (2, HW)
    dudy = rowmask * (shift(u, W) - u)

    sm_sum = (jnp.sum(dudx * dudx, keepdims=True)
              + jnp.sum(dudy * dudy, keepdims=True))                   # (1, 1)

    det = ((1.0 + dudy[0:1, :]) * (1.0 + dudx[1:2, :])
           - dudx[0:1, :] * dudy[1:2, :])                              # (1, HW)
    jac_sum = jnp.sum(rowmask * colmask * jnp.maximum(-det, 0.0), keepdims=True)

    # per-batch loss partials, lane-dense: [mse, jac, smooth] in lanes 0..2
    loss_vec = (mse_sum * (p_i == 0).astype(jnp.float32)
                + jac_sum * (p_i == 1).astype(jnp.float32)
                + sm_sum * (p_i == 2).astype(jnp.float32))             # (1, HW)

    # single 4-sublane, lane-dense store: [warped; disp_y; disp_x; loss partials]
    out_ref[0] = jnp.concatenate([warped, u, loss_vec], axis=0)        # (4, HW)


# ================================= wrappers =====================================
def _prep_weights(params):
    """Pack conv weights into im2col matmul form (columns ordered (k, ci))."""
    w1 = params["w1"].astype(jnp.float32)                 # (CH, 2, 3, 3)
    b1 = params["b1"].astype(jnp.float32)                 # (CH,)
    w2 = params["w2"].astype(jnp.float32)                 # (2, CH, 3, 3)
    w1_ab = jnp.transpose(w1, (0, 2, 3, 1)).reshape(CH, 18)            # N[A, B]
    w1_ba = jnp.transpose(w1[:, ::-1], (0, 2, 3, 1)).reshape(CH, 18)   # N[B, A]
    w1s = jnp.concatenate([w1_ab, w1_ba], axis=0)                      # (2*CH, 18)
    b1s = jnp.concatenate([b1, b1], axis=0)[:, None]                   # (2*CH, 1)
    w2m = jnp.transpose(w2, (0, 2, 3, 1)).reshape(2, 9 * CH)           # (2, 72)
    # layer-2 bias b2 cancels in N[A,B] - N[B,A]
    return w1s, b1s, w2m


def _gauss_matrix():
    """Constant (2, 18) block-diagonal 3x3 Gaussian matrix for vel = G @ im2col(diff);
    `multiplier` and the 1/2^KSTEPS scaling-and-squaring pre-scale are folded in."""
    gk = jnp.array([1., 2., 1., 2., 4., 2., 1., 2., 1.], jnp.float32) / 16.0
    G = jnp.kron(gk[None, :], jnp.eye(2, dtype=jnp.float32))           # (2, 18)
    return G * jnp.float32(MULTIPLIER / (2 ** KSTEPS))


def _unflatten_onehot():
    """Constant (HW, W) column one-hot used by the in-kernel unflatten matmul."""
    p = jnp.arange(HW)
    return (p[:, None] % W == jnp.arange(W)[None, :]).astype(jnp.float32)


def registration_forward(moving, fixed, params):
    """Mirrors RegistrationNetwork.forward: returns (transformed, displacement, loss)."""
    bsz = moving.shape[0]
    inp = jnp.concatenate(
        [moving.reshape(bsz, 1, HW), fixed.reshape(bsz, 1, HW)],
        axis=1).astype(jnp.float32)                                    # (bsz, 2, HW)
    w1s, b1s, w2m = _prep_weights(params)
    gmat = _gauss_matrix()
    unflat = _unflatten_onehot()

    out = pl.pallas_call(
        _fused_kernel,
        grid=(bsz,),
        in_specs=[
            pl.BlockSpec((1, 2, HW), lambda b: (b, 0, 0)),     # moving+fixed
            pl.BlockSpec((2 * CH, 18), lambda b: (0, 0)),      # layer-1 weights
            pl.BlockSpec((2 * CH, 1), lambda b: (0, 0)),       # layer-1 bias
            pl.BlockSpec((2, 9 * CH), lambda b: (0, 0)),       # layer-2 weights
            pl.BlockSpec((2, 18), lambda b: (0, 0)),           # Gaussian-blur matrix
            pl.BlockSpec((HW, W), lambda b: (0, 0)),           # unflatten one-hot
        ],
        out_specs=pl.BlockSpec((1, 4, HW), lambda b: (b, 0, 0)),
        out_shape=jax.ShapeDtypeStruct((bsz, 4, HW), jnp.float32),
        compiler_params=pltpu.CompilerParams(dimension_semantics=("parallel",)),
    )(inp, w1s, b1s, w2m, gmat, unflat)

    transformed = out[:, 0].reshape(bsz, 1, H, W)
    displacement = out[:, 1:3].reshape(bsz, 2, H, W)

    mse = jnp.sum(out[:, 3, 0]) / jnp.float32(bsz * H * W)
    jac = jnp.sum(out[:, 3, 1]) / jnp.float32(bsz * (H - 1) * (W - 1))
    sm = jnp.sum(out[:, 3, 2]) / jnp.float32(bsz * 2 * H * W)
    loss = mse + LAMBDA_JACOBIAN * jac + LAMBDA_SMOOTH * sm
    return transformed, displacement, loss


def init_params(key):
    k1, k2, k3, k4 = jax.random.split(key, 4)
    return {
        "w1": 0.2 * jax.random.normal(k1, (CH, 2, 3, 3), jnp.float32),
        "b1": 0.05 * jax.random.normal(k2, (CH,), jnp.float32),
        "w2": 0.05 * jax.random.normal(k3, (2, CH, 3, 3), jnp.float32),
        "b2": 0.05 * jax.random.normal(k4, (2,), jnp.float32),  # cancels in N[A,B]-N[B,A]
    }


if __name__ == "__main__":
    key = jax.random.PRNGKey(0)
    km, kf = jax.random.split(key)
    moving = jax.random.normal(km, (B, 1, H, W), jnp.float32)
    fixed = jax.random.normal(kf, (B, 1, H, W), jnp.float32)
    params = init_params(jax.random.PRNGKey(42))

    fwd = jax.jit(registration_forward)
    transformed, disp, loss = fwd(moving, fixed, params)
    transformed, disp, loss = jax.block_until_ready((transformed, disp, loss))

    assert transformed.shape == (B, 1, H, W)
    assert disp.shape == (B, 2, H, W)
    assert loss.shape == ()
    assert bool(jnp.isfinite(loss))
    print("KERNEL_OK")
</pallas_src>

<mosaic_0001>
module attributes {stable_mosaic.version = 11 : i64} {
  func.func @_fused_kernel(%arg0: i32, %arg1: memref<1x2x256xf32, #tpu.memory_space<vmem>>, %arg2: memref<16x18xf32, #tpu.memory_space<vmem>>, %arg3: memref<16x1xf32, #tpu.memory_space<vmem>>, %arg4: memref<2x72xf32, #tpu.memory_space<vmem>>, %arg5: memref<2x18xf32, #tpu.memory_space<vmem>>, %arg6: memref<256x16xf32, #tpu.memory_space<vmem>>, %arg7: memref<1x4x256xf32, #tpu.memory_space<vmem>>) attributes {dimension_semantics = [#tpu.dimension_semantics<parallel>], iteration_bounds = array<i64: 2>, scalar_prefetch = 0 : i64, scratch_operands = 0 : i64, tpu.core_type = #tpu.core_type<tc>, window_params = [{transform_indices = @transform_0, window_bounds = array<i64: 1, 2, 256>}, {pipeline_mode = #tpu.pipeline_mode<synchronous>, transform_indices = @transform_1, window_bounds = array<i64: 16, 18>}, {pipeline_mode = #tpu.pipeline_mode<synchronous>, transform_indices = @transform_2, window_bounds = array<i64: 16, 1>}, {pipeline_mode = #tpu.pipeline_mode<synchronous>, transform_indices = @transform_3, window_bounds = array<i64: 2, 72>}, {pipeline_mode = #tpu.pipeline_mode<synchronous>, transform_indices = @transform_4, window_bounds = array<i64: 2, 18>}, {pipeline_mode = #tpu.pipeline_mode<synchronous>, transform_indices = @transform_5, window_bounds = array<i64: 256, 16>}, {transform_indices = @transform_6, window_bounds = array<i64: 1, 4, 256>}]} {
    %c0 = arith.constant 0 : index
    %c0_0 = arith.constant 0 : index
    %c0_1 = arith.constant 0 : index
    %0 = vector.load %arg1[%c0, %c0_0, %c0_1] : memref<1x2x256xf32, #tpu.memory_space<vmem>>, vector<1x2x256xf32>
    %1 = vector.shape_cast %0 : vector<1x2x256xf32> to vector<2x256xf32>
    %2 = vector.extract_strided_slice %1 {offsets = [0, 0], sizes = [1, 256], strides = [1, 1]} : vector<2x256xf32> to vector<1x256xf32>
    %3 = vector.extract_strided_slice %1 {offsets = [1, 0], sizes = [1, 256], strides = [1, 1]} : vector<2x256xf32> to vector<1x256xf32>
    %4 = tpu.iota {dimensions = array<i32: 1>} : vector<1x256xi32>
    %c15_i32 = arith.constant 15 : i32
    %5 = vector.broadcast %c15_i32 : i32 to vector<1x256xi32>
    %6 = arith.andi %4, %5 : vector<1x256xi32>
    %c4_i32 = arith.constant 4 : i32
    %7 = vector.broadcast %c4_i32 : i32 to vector<1x256xi32>
    %8 = arith.shrui %4, %7 : vector<1x256xi32>
    %9 = arith.sitofp %6 : vector<1x256xi32> to vector<1x256xf32>
    %10 = arith.sitofp %8 : vector<1x256xi32> to vector<1x256xf32>
    %c1_i32 = arith.constant 1 : i32
    %11 = vector.broadcast %c1_i32 : i32 to vector<1x256xi32>
    %12 = arith.cmpi sge, %6, %11 : vector<1x256xi32>
    %13 = arith.extui %12 : vector<1x256xi1> to vector<1x256xi32>
    %14 = arith.sitofp %13 : vector<1x256xi32> to vector<1x256xf32>
    %c14_i32 = arith.constant 14 : i32
    %15 = vector.broadcast %c14_i32 : i32 to vector<1x256xi32>
    %16 = arith.cmpi sle, %6, %15 : vector<1x256xi32>
    %17 = arith.extui %16 : vector<1x256xi1> to vector<1x256xi32>
    %18 = arith.sitofp %17 : vector<1x256xi32> to vector<1x256xf32>
    %c1_i32_2 = arith.constant 1 : i32
    %19 = vector.broadcast %c1_i32_2 : i32 to vector<1x256xi32>
    %20 = arith.cmpi sge, %8, %19 : vector<1x256xi32>
    %21 = arith.extui %20 : vector<1x256xi1> to vector<1x256xi32>
    %22 = arith.sitofp %21 : vector<1x256xi32> to vector<1x256xf32>
    %c14_i32_3 = arith.constant 14 : i32
    %23 = vector.broadcast %c14_i32_3 : i32 to vector<1x256xi32>
    %24 = arith.cmpi sle, %8, %23 : vector<1x256xi32>
    %25 = arith.extui %24 : vector<1x256xi1> to vector<1x256xi32>
    %26 = arith.sitofp %25 : vector<1x256xi32> to vector<1x256xf32>
    %27 = arith.mulf %14, %22 : vector<1x256xf32>
    %28 = arith.mulf %18, %22 : vector<1x256xf32>
    %29 = arith.mulf %14, %26 : vector<1x256xf32>
    %30 = arith.mulf %18, %26 : vector<1x256xf32>
    %c17_i32 = arith.constant 17 : i32
    %31 = tpu.dynamic_rotate %1 by %c17_i32 dim 1 : vector<2x256xf32>, i32 -> vector<2x256xf32>
    %32 = vector.broadcast %27 : vector<1x256xf32> to vector<2x256xf32>
    %33 = arith.mulf %32, %31 : vector<2x256xf32>
    %c16_i32 = arith.constant 16 : i32
    %34 = tpu.dynamic_rotate %1 by %c16_i32 dim 1 : vector<2x256xf32>, i32 -> vector<2x256xf32>
    %35 = vector.broadcast %22 : vector<1x256xf32> to vector<2x256xf32>
    %36 = arith.mulf %35, %34 : vector<2x256xf32>
    %c15_i32_4 = arith.constant 15 : i32
    %37 = tpu.dynamic_rotate %1 by %c15_i32_4 dim 1 : vector<2x256xf32>, i32 -> vector<2x256xf32>
    %38 = vector.broadcast %28 : vector<1x256xf32> to vector<2x256xf32>
    %39 = arith.mulf %38, %37 : vector<2x256xf32>
    %c1_i32_5 = arith.constant 1 : i32
    %40 = tpu.dynamic_rotate %1 by %c1_i32_5 dim 1 : vector<2x256xf32>, i32 -> vector<2x256xf32>
    %41 = vector.broadcast %14 : vector<1x256xf32> to vector<2x256xf32>
    %42 = arith.mulf %41, %40 : vector<2x256xf32>
    %c255_i32 = arith.constant 255 : i32
    %43 = tpu.dynamic_rotate %1 by %c255_i32 dim 1 : vector<2x256xf32>, i32 -> vector<2x256xf32>
    %44 = vector.broadcast %18 : vector<1x256xf32> to vector<2x256xf32>
    %45 = arith.mulf %44, %43 : vector<2x256xf32>
    %c241_i32 = arith.constant 241 : i32
    %46 = tpu.dynamic_rotate %1 by %c241_i32 dim 1 : vector<2x256xf32>, i32 -> vector<2x256xf32>
    %47 = vector.broadcast %29 : vector<1x256xf32> to vector<2x256xf32>
    %48 = arith.mulf %47, %46 : vector<2x256xf32>
    %c240_i32 = arith.constant 240 : i32
    %49 = tpu.dynamic_rotate %1 by %c240_i32 dim 1 : vector<2x256xf32>, i32 -> vector<2x256xf32>
    %50 = vector.broadcast %26 : vector<1x256xf32> to vector<2x256xf32>
    %51 = arith.mulf %50, %49 : vector<2x256xf32>
    %c239_i32 = arith.constant 239 : i32
    %52 = tpu.dynamic_rotate %1 by %c239_i32 dim 1 : vector<2x256xf32>, i32 -> vector<2x256xf32>
    %53 = vector.broadcast %30 : vector<1x256xf32> to vector<2x256xf32>
    %54 = arith.mulf %53, %52 : vector<2x256xf32>
    %55 = tpu.concatenate %33, %36, %39, %42, %1, %45, %48, %51, %54 in 0 : vector<2x256xf32>, vector<2x256xf32>, vector<2x256xf32>, vector<2x256xf32>, vector<2x256xf32>, vector<2x256xf32>, vector<2x256xf32>, vector<2x256xf32>, vector<2x256xf32> -> vector<18x256xf32>
    %c0_6 = arith.constant 0 : index
    %c0_7 = arith.constant 0 : index
    %56 = vector.load %arg2[%c0_6, %c0_7] : memref<16x18xf32, #tpu.memory_space<vmem>>, vector<16x18xf32>
    %cst = arith.constant dense<0.000000e+00> : vector<16x256xf32>
    %57 = tpu.matmul %56, %55, %cst {dimension_numbers = #tpu.dot_dimension_numbers<[1], [0], [0], [1], [0, 0, 1, 1], [], []>} : vector<16x18xf32>, vector<18x256xf32>, vector<16x256xf32> -> vector<16x256xf32>
    %c0_8 = arith.constant 0 : index
    %c0_9 = arith.constant 0 : index
    %58 = vector.load %arg3[%c0_8, %c0_9] : memref<16x1xf32, #tpu.memory_space<vmem>>, vector<16x1xf32>
    %59 = vector.broadcast %58 : vector<16x1xf32> to vector<16x256xf32>
    %60 = arith.addf %57, %59 : vector<16x256xf32>
    %cst_10 = arith.constant 0.000000e+00 : f32
    %61 = vector.broadcast %cst_10 : f32 to vector<16x256xf32>
    %62 = arith.maximumf %60, %61 : vector<16x256xf32>
    %63 = vector.extract_strided_slice %62 {offsets = [0, 0], sizes = [8, 256], strides = [1, 1]} : vector<16x256xf32> to vector<8x256xf32>
    %64 = vector.extract_strided_slice %62 {offsets = [8, 0], sizes = [8, 256], strides = [1, 1]} : vector<16x256xf32> to vector<8x256xf32>
    %65 = arith.subf %63, %64 : vector<8x256xf32>
    %c0_11 = arith.constant 0 : index
    %c0_12 = arith.constant 0 : index
    %66 = vector.load %arg4[%c0_11, %c0_12] : memref<2x72xf32, #tpu.memory_space<vmem>>, vector<2x72xf32>
    %c17_i32_13 = arith.constant 17 : i32
    %67 = tpu.dynamic_rotate %65 by %c17_i32_13 dim 1 : vector<8x256xf32>, i32 -> vector<8x256xf32>
    %68 = vector.broadcast %27 : vector<1x256xf32> to vector<8x256xf32>
    %69 = arith.mulf %68, %67 : vector<8x256xf32>
    %c16_i32_14 = arith.constant 16 : i32
    %70 = tpu.dynamic_rotate %65 by %c16_i32_14 dim 1 : vector<8x256xf32>, i32 -> vector<8x256xf32>
    %71 = vector.broadcast %22 : vector<1x256xf32> to vector<8x256xf32>
    %72 = arith.mulf %71, %70 : vector<8x256xf32>
    %c15_i32_15 = arith.constant 15 : i32
    %73 = tpu.dynamic_rotate %65 by %c15_i32_15 dim 1 : vector<8x256xf32>, i32 -> vector<8x256xf32>
    %74 = vector.broadcast %28 : vector<1x256xf32> to vector<8x256xf32>
    %75 = arith.mulf %74, %73 : vector<8x256xf32>
    %c1_i32_16 = arith.constant 1 : i32
    %76 = tpu.dynamic_rotate %65 by %c1_i32_16 dim 1 : vector<8x256xf32>, i32 -> vector<8x256xf32>
    %77 = vector.broadcast %14 : vector<1x256xf32> to vector<8x256xf32>
    %78 = arith.mulf %77, %76 : vector<8x256xf32>
    %c255_i32_17 = arith.constant 255 : i32
    %79 = tpu.dynamic_rotate %65 by %c255_i32_17 dim 1 : vector<8x256xf32>, i32 -> vector<8x256xf32>
    %80 = vector.broadcast %18 : vector<1x256xf32> to vector<8x256xf32>
    %81 = arith.mulf %80, %79 : vector<8x256xf32>
    %c241_i32_18 = arith.constant 241 : i32
    %82 = tpu.dynamic_rotate %65 by %c241_i32_18 dim 1 : vector<8x256xf32>, i32 -> vector<8x256xf32>
    %83 = vector.broadcast %29 : vector<1x256xf32> to vector<8x256xf32>
    %84 = arith.mulf %83, %82 : vector<8x256xf32>
    %c240_i32_19 = arith.constant 240 : i32
    %85 = tpu.dynamic_rotate %65 by %c240_i32_19 dim 1 : vector<8x256xf32>, i32 -> vector<8x256xf32>
    %86 = vector.broadcast %26 : vector<1x256xf32> to vector<8x256xf32>
    %87 = arith.mulf %86, %85 : vector<8x256xf32>
    %c239_i32_20 = arith.constant 239 : i32
    %88 = tpu.dynamic_rotate %65 by %c239_i32_20 dim 1 : vector<8x256xf32>, i32 -> vector<8x256xf32>
    %89 = vector.broadcast %30 : vector<1x256xf32> to vector<8x256xf32>
    %90 = arith.mulf %89, %88 : vector<8x256xf32>
    %91 = tpu.concatenate %69, %72, %75, %78, %65, %81, %84, %87, %90 in 0 : vector<8x256xf32>, vector<8x256xf32>, vector<8x256xf32>, vector<8x256xf32>, vector<8x256xf32>, vector<8x256xf32>, vector<8x256xf32>, vector<8x256xf32>, vector<8x256xf32> -> vector<72x256xf32>
    %cst_21 = arith.constant dense<0.000000e+00> : vector<2x256xf32>
    %92 = tpu.matmul %66, %91, %cst_21 {dimension_numbers = #tpu.dot_dimension_numbers<[1], [0], [0], [1], [0, 0, 1, 1], [], []>} : vector<2x72xf32>, vector<72x256xf32>, vector<2x256xf32> -> vector<2x256xf32>
    %93 = arith.subf %2, %3 : vector<1x256xf32>
    %94 = arith.mulf %93, %93 : vector<1x256xf32>
    %95 = vector.shape_cast %94 : vector<1x256xf32> to vector<1x1x256xf32>
    %cst_22 = arith.constant dense<0.000000e+00> : vector<1xf32>
    %96 = vector.multi_reduction <add>, %95, %cst_22 [1, 2] : vector<1x1x256xf32> to vector<1xf32>
    %97 = vector.shape_cast %96 : vector<1xf32> to vector<1x1x1xf32>
    %98 = vector.extract %97[0, 0, 0] : f32 from vector<1x1x1xf32>
    %99 = vector.broadcast %98 : f32 to vector<1x1xf32>
    %c0_23 = arith.constant 0 : index
    %c0_24 = arith.constant 0 : index
    %100 = vector.load %arg5[%c0_23, %c0_24] : memref<2x18xf32, #tpu.memory_space<vmem>>, vector<2x18xf32>
    %c17_i32_25 = arith.constant 17 : i32
    %101 = tpu.dynamic_rotate %92 by %c17_i32_25 dim 1 : vector<2x256xf32>, i32 -> vector<2x256xf32>
    %102 = vector.broadcast %27 : vector<1x256xf32> to vector<2x256xf32>
    %103 = arith.mulf %102, %101 : vector<2x256xf32>
    %c16_i32_26 = arith.constant 16 : i32
    %104 = tpu.dynamic_rotate %92 by %c16_i32_26 dim 1 : vector<2x256xf32>, i32 -> vector<2x256xf32>
    %105 = vector.broadcast %22 : vector<1x256xf32> to vector<2x256xf32>
    %106 = arith.mulf %105, %104 : vector<2x256xf32>
    %c15_i32_27 = arith.constant 15 : i32
    %107 = tpu.dynamic_rotate %92 by %c15_i32_27 dim 1 : vector<2x256xf32>, i32 -> vector<2x256xf32>
    %108 = vector.broadcast %28 : vector<1x256xf32> to vector<2x256xf32>
    %109 = arith.mulf %108, %107 : vector<2x256xf32>
    %c1_i32_28 = arith.constant 1 : i32
    %110 = tpu.dynamic_rotate %92 by %c1_i32_28 dim 1 : vector<2x256xf32>, i32 -> vector<2x256xf32>
    %111 = vector.broadcast %14 : vector<1x256xf32> to vector<2x256xf32>
    %112 = arith.mulf %111, %110 : vector<2x256xf32>
    %c255_i32_29 = arith.constant 255 : i32
    %113 = tpu.dynamic_rotate %92 by %c255_i32_29 dim 1 : vector<2x256xf32>, i32 -> vector<2x256xf32>
    %114 = vector.broadcast %18 : vector<1x256xf32> to vector<2x256xf32>
    %115 = arith.mulf %114, %113 : vector<2x256xf32>
    %c241_i32_30 = arith.constant 241 : i32
    %116 = tpu.dynamic_rotate %92 by %c241_i32_30 dim 1 : vector<2x256xf32>, i32 -> vector<2x256xf32>
    %117 = vector.broadcast %29 : vector<1x256xf32> to vector<2x256xf32>
    %118 = arith.mulf %117, %116 : vector<2x256xf32>
    %c240_i32_31 = arith.constant 240 : i32
    %119 = tpu.dynamic_rotate %92 by %c240_i32_31 dim 1 : vector<2x256xf32>, i32 -> vector<2x256xf32>
    %120 = vector.broadcast %26 : vector<1x256xf32> to vector<2x256xf32>
    %121 = arith.mulf %120, %119 : vector<2x256xf32>
    %c239_i32_32 = arith.constant 239 : i32
    %122 = tpu.dynamic_rotate %92 by %c239_i32_32 dim 1 : vector<2x256xf32>, i32 -> vector<2x256xf32>
    %123 = vector.broadcast %30 : vector<1x256xf32> to vector<2x256xf32>
    %124 = arith.mulf %123, %122 : vector<2x256xf32>
    %125 = tpu.concatenate %103, %106, %109, %112, %92, %115, %118, %121, %124 in 0 : vector<2x256xf32>, vector<2x256xf32>, vector<2x256xf32>, vector<2x256xf32>, vector<2x256xf32>, vector<2x256xf32>, vector<2x256xf32>, vector<2x256xf32>, vector<2x256xf32> -> vector<18x256xf32>
    %cst_33 = arith.constant dense<0.000000e+00> : vector<2x256xf32>
    %126 = tpu.matmul %100, %125, %cst_33 {dimension_numbers = #tpu.dot_dimension_numbers<[1], [0], [0], [1], [0, 0, 1, 1], [], []>} : vector<2x18xf32>, vector<18x256xf32>, vector<2x256xf32> -> vector<2x256xf32>
    %127 = tpu.iota {dimensions = array<i32: 0>} : vector<16x256xi32>
    %128 = tpu.iota {dimensions = array<i32: 0>} : vector<16x256xi32>
    %129 = arith.sitofp %127 : vector<16x256xi32> to vector<16x256xf32>
    %130 = arith.sitofp %128 : vector<16x256xi32> to vector<16x256xf32>
    %131 = vector.broadcast %8 : vector<1x256xi32> to vector<16x256xi32>
    %132 = arith.cmpi eq, %127, %131 : vector<16x256xi32>
    %133 = arith.extui %132 : vector<16x256xi1> to vector<16x256xi32>
    %134 = arith.sitofp %133 : vector<16x256xi32> to vector<16x256xf32>
    %c0_34 = arith.constant 0 : index
    %c0_35 = arith.constant 0 : index
    %135 = vector.load %arg6[%c0_34, %c0_35] : memref<256x16xf32, #tpu.memory_space<vmem>>, vector<256x16xf32>
    %c0_i32 = arith.constant 0 : i32
    %136 = vector.extract_strided_slice %126 {offsets = [0, 0], sizes = [1, 256], strides = [1, 1]} : vector<2x256xf32> to vector<1x256xf32>
    %137 = vector.extract_strided_slice %126 {offsets = [1, 0], sizes = [1, 256], strides = [1, 1]} : vector<2x256xf32> to vector<1x256xf32>
    %138 = vector.broadcast %136 : vector<1x256xf32> to vector<16x256xf32>
    %139 = arith.mulf %134, %138 : vector<16x256xf32>
    %140 = vector.broadcast %137 : vector<1x256xf32> to vector<16x256xf32>
    %141 = arith.mulf %134, %140 : vector<16x256xf32>
    %142 = tpu.concatenate %139, %141 in 0 : vector<16x256xf32>, vector<16x256xf32> -> vector<32x256xf32>
    %cst_36 = arith.constant dense<0.000000e+00> : vector<32x16xf32>
    %143 = tpu.matmul %142, %135, %cst_36 {dimension_numbers = #tpu.dot_dimension_numbers<[1], [0], [0], [1], [0, 0, 1, 1], [], []>} : vector<32x256xf32>, vector<256x16xf32>, vector<32x16xf32> -> vector<32x16xf32>
    %144 = arith.addf %10, %136 : vector<1x256xf32>
    %cst_37 = arith.constant 0.000000e+00 : f32
    %cst_38 = arith.constant 1.500000e+01 : f32
    %145 = vector.broadcast %cst_37 : f32 to vector<1x256xf32>
    %146 = arith.maximumf %145, %144 : vector<1x256xf32>
    %147 = vector.broadcast %cst_38 : f32 to vector<1x256xf32>
    %148 = arith.minimumf %147, %146 : vector<1x256xf32>
    %149 = arith.addf %9, %137 : vector<1x256xf32>
    %cst_39 = arith.constant 0.000000e+00 : f32
    %cst_40 = arith.constant 1.500000e+01 : f32
    %150 = vector.broadcast %cst_39 : f32 to vector<1x256xf32>
    %151 = arith.maximumf %150, %149 : vector<1x256xf32>
    %152 = vector.broadcast %cst_40 : f32 to vector<1x256xf32>
    %153 = arith.minimumf %152, %151 : vector<1x256xf32>
    %154 = vector.broadcast %148 : vector<1x256xf32> to vector<16x256xf32>
    %155 = arith.subf %129, %154 : vector<16x256xf32>
    %156 = math.absf %155 : vector<16x256xf32>
    %cst_41 = arith.constant 1.000000e+00 : f32
    %157 = vector.broadcast %cst_41 : f32 to vector<16x256xf32>
    %158 = arith.subf %157, %156 : vector<16x256xf32>
    %cst_42 = arith.constant 0.000000e+00 : f32
    %159 = vector.broadcast %cst_42 : f32 to vector<16x256xf32>
    %160 = arith.maximumf %158, %159 : vector<16x256xf32>
    %161 = vector.broadcast %153 : vector<1x256xf32> to vector<16x256xf32>
    %162 = arith.subf %130, %161 : vector<16x256xf32>
    %163 = math.absf %162 : vector<16x256xf32>
    %cst_43 = arith.constant 1.000000e+00 : f32
    %164 = vector.broadcast %cst_43 : f32 to vector<16x256xf32>
    %165 = arith.subf %164, %163 : vector<16x256xf32>
    %cst_44 = arith.constant 0.000000e+00 : f32
    %166 = vector.broadcast %cst_44 : f32 to vector<16x256xf32>
    %167 = arith.maximumf %165, %166 : vector<16x256xf32>
    %cst_45 = arith.constant dense<0.000000e+00> : vector<32x256xf32>
    %168 = tpu.matmul %143, %167, %cst_45 {dimension_numbers = #tpu.dot_dimension_numbers<[1], [0], [0], [1], [0, 0, 1, 1], [], []>} : vector<32x16xf32>, vector<16x256xf32>, vector<32x256xf32> -> vector<32x256xf32>
    %169 = vector.extract_strided_slice %168 {offsets = [0, 0], sizes = [16, 256], strides = [1, 1]} : vector<32x256xf32> to vector<16x256xf32>
    %170 = arith.mulf %160, %169 : vector<16x256xf32>
    %cst_46 = arith.constant dense<0.000000e+00> : vector<256xf32>
    %171 = vector.multi_reduction <add>, %170, %cst_46 [0] : vector<16x256xf32> to vector<256xf32>
    %172 = vector.shape_cast %171 : vector<256xf32> to vector<1x256xf32>
    %173 = vector.extract_strided_slice %168 {offsets = [16, 0], sizes = [16, 256], strides = [1, 1]} : vector<32x256xf32> to vector<16x256xf32>
    %174 = arith.mulf %160, %173 : vector<16x256xf32>
    %cst_47 = arith.constant dense<0.000000e+00> : vector<256xf32>
    %175 = vector.multi_reduction <add>, %174, %cst_47 [0] : vector<16x256xf32> to vector<256xf32>
    %176 = vector.shape_cast %175 : vector<256xf32> to vector<1x256xf32>
    %177 = tpu.concatenate %172, %176 in 0 : vector<1x256xf32>, vector<1x256xf32> -> vector<2x256xf32>
    %178 = arith.addf %126, %177 : vector<2x256xf32>
    %c1_i32_48 = arith.constant 1 : i32
    %179 = vector.extract_strided_slice %178 {offsets = [0, 0], sizes = [1, 256], strides = [1, 1]} : vector<2x256xf32> to vector<1x256xf32>
    %180 = vector.extract_strided_slice %178 {offsets = [1, 0], sizes = [1, 256], strides = [1, 1]} : vector<2x256xf32> to vector<1x256xf32>
    %181 = vector.broadcast %179 : vector<1x256xf32> to vector<16x256xf32>
    %182 = arith.mulf %134, %181 : vector<16x256xf32>
    %183 = vector.broadcast %180 : vector<1x256xf32> to vector<16x256xf32>
    %184 = arith.mulf %134, %183 : vector<16x256xf32>
    %185 = tpu.concatenate %182, %184 in 0 : vector<16x256xf32>, vector<16x256xf32> -> vector<32x256xf32>
    %cst_49 = arith.constant dense<0.000000e+00> : vector<32x16xf32>
    %186 = tpu.matmul %185, %135, %cst_49 {dimension_numbers = #tpu.dot_dimension_numbers<[1], [0], [0], [1], [0, 0, 1, 1], [], []>} : vector<32x256xf32>, vector<256x16xf32>, vector<32x16xf32> -> vector<32x16xf32>
    %187 = arith.addf %10, %179 : vector<1x256xf32>
    %cst_50 = arith.constant 0.000000e+00 : f32
    %cst_51 = arith.constant 1.500000e+01 : f32
    %188 = vector.broadcast %cst_50 : f32 to vector<1x256xf32>
    %189 = arith.maximumf %188, %187 : vector<1x256xf32>
    %190 = vector.broadcast %cst_51 : f32 to vector<1x256xf32>
    %191 = arith.minimumf %190, %189 : vector<1x256xf32>
    %192 = arith.addf %9, %180 : vector<1x256xf32>
    %cst_52 = arith.constant 0.000000e+00 : f32
    %cst_53 = arith.constant 1.500000e+01 : f32
    %193 = vector.broadcast %cst_52 : f32 to vector<1x256xf32>
    %194 = arith.maximumf %193, %192 : vector<1x256xf32>
    %195 = vector.broadcast %cst_53 : f32 to vector<1x256xf32>
    %196 = arith.minimumf %195, %194 : vector<1x256xf32>
    %197 = vector.broadcast %191 : vector<1x256xf32> to vector<16x256xf32>
    %198 = arith.subf %129, %197 : vector<16x256xf32>
    %199 = math.absf %198 : vector<16x256xf32>
    %cst_54 = arith.constant 1.000000e+00 : f32
    %200 = vector.broadcast %cst_54 : f32 to vector<16x256xf32>
    %201 = arith.subf %200, %199 : vector<16x256xf32>
    %cst_55 = arith.constant 0.000000e+00 : f32
    %202 = vector.broadcast %cst_55 : f32 to vector<16x256xf32>
    %203 = arith.maximumf %201, %202 : vector<16x256xf32>
    %204 = vector.broadcast %196 : vector<1x256xf32> to vector<16x256xf32>
    %205 = arith.subf %130, %204 : vector<16x256xf32>
    %206 = math.absf %205 : vector<16x256xf32>
    %cst_56 = arith.constant 1.000000e+00 : f32
    %207 = vector.broadcast %cst_56 : f32 to vector<16x256xf32>
    %208 = arith.subf %207, %206 : vector<16x256xf32>
    %cst_57 = arith.constant 0.000000e+00 : f32
    %209 = vector.broadcast %cst_57 : f32 to vector<16x256xf32>
    %210 = arith.maximumf %208, %209 : vector<16x256xf32>
    %cst_58 = arith.constant dense<0.000000e+00> : vector<32x256xf32>
    %211 = tpu.matmul %186, %210, %cst_58 {dimension_numbers = #tpu.dot_dimension_numbers<[1], [0], [0], [1], [0, 0, 1, 1], [], []>} : vector<32x16xf32>, vector<16x256xf32>, vector<32x256xf32> -> vector<32x256xf32>
    %212 = vector.extract_strided_slice %211 {offsets = [0, 0], sizes = [16, 256], strides = [1, 1]} : vector<32x256xf32> to vector<16x256xf32>
    %213 = arith.mulf %203, %212 : vector<16x256xf32>
    %cst_59 = arith.constant dense<0.000000e+00> : vector<256xf32>
    %214 = vector.multi_reduction <add>, %213, %cst_59 [0] : vector<16x256xf32> to vector<256xf32>
    %215 = vector.shape_cast %214 : vector<256xf32> to vector<1x256xf32>
    %216 = vector.extract_strided_slice %211 {offsets = [16, 0], sizes = [16, 256], strides = [1, 1]} : vector<32x256xf32> to vector<16x256xf32>
    %217 = arith.mulf %203, %216 : vector<16x256xf32>
    %cst_60 = arith.constant dense<0.000000e+00> : vector<256xf32>
    %218 = vector.multi_reduction <add>, %217, %cst_60 [0] : vector<16x256xf32> to vector<256xf32>
    %219 = vector.shape_cast %218 : vector<256xf32> to vector<1x256xf32>
    %220 = tpu.concatenate %215, %219 in 0 : vector<1x256xf32>, vector<1x256xf32> -> vector<2x256xf32>
    %221 = arith.addf %178, %220 : vector<2x256xf32>
    %c2_i32 = arith.constant 2 : i32
    %222 = vector.extract_strided_slice %221 {offsets = [0, 0], sizes = [1, 256], strides = [1, 1]} : vector<2x256xf32> to vector<1x256xf32>
    %223 = vector.extract_strided_slice %221 {offsets = [1, 0], sizes = [1, 256], strides = [1, 1]} : vector<2x256xf32> to vector<1x256xf32>
    %224 = vector.broadcast %222 : vector<1x256xf32> to vector<16x256xf32>
    %225 = arith.mulf %134, %224 : vector<16x256xf32>
    %226 = vector.broadcast %223 : vector<1x256xf32> to vector<16x256xf32>
    %227 = arith.mulf %134, %226 : vector<16x256xf32>
    %228 = tpu.concatenate %225, %227 in 0 : vector<16x256xf32>, vector<16x256xf32> -> vector<32x256xf32>
    %cst_61 = arith.constant dense<0.000000e+00> : vector<32x16xf32>
    %229 = tpu.matmul %228, %135, %cst_61 {dimension_numbers = #tpu.dot_dimension_numbers<[1], [0], [0], [1], [0, 0, 1, 1], [], []>} : vector<32x256xf32>, vector<256x16xf32>, vector<32x16xf32> -> vector<32x16xf32>
    %230 = arith.addf %10, %222 : vector<1x256xf32>
    %cst_62 = arith.constant 0.000000e+00 : f32
    %cst_63 = arith.constant 1.500000e+01 : f32
    %231 = vector.broadcast %cst_62 : f32 to vector<1x256xf32>
    %232 = arith.maximumf %231, %230 : vector<1x256xf32>
    %233 = vector.broadcast %cst_63 : f32 to vector<1x256xf32>
    %234 = arith.minimumf %233, %232 : vector<1x256xf32>
    %235 = arith.addf %9, %223 : vector<1x256xf32>
    %cst_64 = arith.constant 0.000000e+00 : f32
    %cst_65 = arith.constant 1.500000e+01 : f32
    %236 = vector.broadcast %cst_64 : f32 to vector<1x256xf32>
    %237 = arith.maximumf %236, %235 : vector<1x256xf32>
    %238 = vector.broadcast %cst_65 : f32 to vector<1x256xf32>
    %239 = arith.minimumf %238, %237 : vector<1x256xf32>
    %240 = vector.broadcast %234 : vector<1x256xf32> to vector<16x256xf32>
    %241 = arith.subf %129, %240 : vector<16x256xf32>
    %242 = math.absf %241 : vector<16x256xf32>
    %cst_66 = arith.constant 1.000000e+00 : f32
    %243 = vector.broadcast %cst_66 : f32 to vector<16x256xf32>
    %244 = arith.subf %243, %242 : vector<16x256xf32>
    %cst_67 = arith.constant 0.000000e+00 : f32
    %245 = vector.broadcast %cst_67 : f32 to vector<16x256xf32>
    %246 = arith.maximumf %244, %245 : vector<16x256xf32>
    %247 = vector.broadcast %239 : vector<1x256xf32> to vector<16x256xf32>
    %248 = arith.subf %130, %247 : vector<16x256xf32>
    %249 = math.absf %248 : vector<16x256xf32>
    %cst_68 = arith.constant 1.000000e+00 : f32
    %250 = vector.broadcast %cst_68 : f32 to vector<16x256xf32>
    %251 = arith.subf %250, %249 : vector<16x256xf32>
    %cst_69 = arith.constant 0.000000e+00 : f32
    %252 = vector.broadcast %cst_69 : f32 to vector<16x256xf32>
    %253 = arith.maximumf %251, %252 : vector<16x256xf32>
    %cst_70 = arith.constant dense<0.000000e+00> : vector<32x256xf32>
    %254 = tpu.matmul %229, %253, %cst_70 {dimension_numbers = #tpu.dot_dimension_numbers<[1], [0], [0], [1], [0, 0, 1, 1], [], []>} : vector<32x16xf32>, vector<16x256xf32>, vector<32x256xf32> -> vector<32x256xf32>
    %255 = vector.extract_strided_slice %254 {offsets = [0, 0], sizes = [16, 256], strides = [1, 1]} : vector<32x256xf32> to vector<16x256xf32>
    %256 = arith.mulf %246, %255 : vector<16x256xf32>
    %cst_71 = arith.constant dense<0.000000e+00> : vector<256xf32>
    %257 = vector.multi_reduction <add>, %256, %cst_71 [0] : vector<16x256xf32> to vector<256xf32>
    %258 = vector.shape_cast %257 : vector<256xf32> to vector<1x256xf32>
    %259 = vector.extract_strided_slice %254 {offsets = [16, 0], sizes = [16, 256], strides = [1, 1]} : vector<32x256xf32> to vector<16x256xf32>
    %260 = arith.mulf %246, %259 : vector<16x256xf32>
    %cst_72 = arith.constant dense<0.000000e+00> : vector<256xf32>
    %261 = vector.multi_reduction <add>, %260, %cst_72 [0] : vector<16x256xf32> to vector<256xf32>
    %262 = vector.shape_cast %261 : vector<256xf32> to vector<1x256xf32>
    %263 = tpu.concatenate %258, %262 in 0 : vector<1x256xf32>, vector<1x256xf32> -> vector<2x256xf32>
    %264 = arith.addf %221, %263 : vector<2x256xf32>
    %c3_i32 = arith.constant 3 : i32
    %265 = vector.extract_strided_slice %264 {offsets = [0, 0], sizes = [1, 256], strides = [1, 1]} : vector<2x256xf32> to vector<1x256xf32>
    %266 = vector.extract_strided_slice %264 {offsets = [1, 0], sizes = [1, 256], strides = [1, 1]} : vector<2x256xf32> to vector<1x256xf32>
    %267 = vector.broadcast %265 : vector<1x256xf32> to vector<16x256xf32>
    %268 = arith.mulf %134, %267 : vector<16x256xf32>
    %269 = vector.broadcast %266 : vector<1x256xf32> to vector<16x256xf32>
    %270 = arith.mulf %134, %269 : vector<16x256xf32>
    %271 = tpu.concatenate %268, %270 in 0 : vector<16x256xf32>, vector<16x256xf32> -> vector<32x256xf32>
    %cst_73 = arith.constant dense<0.000000e+00> : vector<32x16xf32>
    %272 = tpu.matmul %271, %135, %cst_73 {dimension_numbers = #tpu.dot_dimension_numbers<[1], [0], [0], [1], [0, 0, 1, 1], [], []>} : vector<32x256xf32>, vector<256x16xf32>, vector<32x16xf32> -> vector<32x16xf32>
    %273 = arith.addf %10, %265 : vector<1x256xf32>
    %cst_74 = arith.constant 0.000000e+00 : f32
    %cst_75 = arith.constant 1.500000e+01 : f32
    %274 = vector.broadcast %cst_74 : f32 to vector<1x256xf32>
    %275 = arith.maximumf %274, %273 : vector<1x256xf32>
    %276 = vector.broadcast %cst_75 : f32 to vector<1x256xf32>
    %277 = arith.minimumf %276, %275 : vector<1x256xf32>
    %278 = arith.addf %9, %266 : vector<1x256xf32>
    %cst_76 = arith.constant 0.000000e+00 : f32
    %cst_77 = arith.constant 1.500000e+01 : f32
    %279 = vector.broadcast %cst_76 : f32 to vector<1x256xf32>
    %280 = arith.maximumf %279, %278 : vector<1x256xf32>
    %281 = vector.broadcast %cst_77 : f32 to vector<1x256xf32>
    %282 = arith.minimumf %281, %280 : vector<1x256xf32>
    %283 = vector.broadcast %277 : vector<1x256xf32> to vector<16x256xf32>
    %284 = arith.subf %129, %283 : vector<16x256xf32>
    %285 = math.absf %284 : vector<16x256xf32>
    %cst_78 = arith.constant 1.000000e+00 : f32
    %286 = vector.broadcast %cst_78 : f32 to vector<16x256xf32>
    %287 = arith.subf %286, %285 : vector<16x256xf32>
    %cst_79 = arith.constant 0.000000e+00 : f32
    %288 = vector.broadcast %cst_79 : f32 to vector<16x256xf32>
    %289 = arith.maximumf %287, %288 : vector<16x256xf32>
    %290 = vector.broadcast %282 : vector<1x256xf32> to vector<16x256xf32>
    %291 = arith.subf %130, %290 : vector<16x256xf32>
    %292 = math.absf %291 : vector<16x256xf32>
    %cst_80 = arith.constant 1.000000e+00 : f32
    %293 = vector.broadcast %cst_80 : f32 to vector<16x256xf32>
    %294 = arith.subf %293, %292 : vector<16x256xf32>
    %cst_81 = arith.constant 0.000000e+00 : f32
    %295 = vector.broadcast %cst_81 : f32 to vector<16x256xf32>
    %296 = arith.maximumf %294, %295 : vector<16x256xf32>
    %cst_82 = arith.constant dense<0.000000e+00> : vector<32x256xf32>
    %297 = tpu.matmul %272, %296, %cst_82 {dimension_numbers = #tpu.dot_dimension_numbers<[1], [0], [0], [1], [0, 0, 1, 1], [], []>} : vector<32x16xf32>, vector<16x256xf32>, vector<32x256xf32> -> vector<32x256xf32>
    %298 = vector.extract_strided_slice %297 {offsets = [0, 0], sizes = [16, 256], strides = [1, 1]} : vector<32x256xf32> to vector<16x256xf32>
    %299 = arith.mulf %289, %298 : vector<16x256xf32>
    %cst_83 = arith.constant dense<0.000000e+00> : vector<256xf32>
    %300 = vector.multi_reduction <add>, %299, %cst_83 [0] : vector<16x256xf32> to vector<256xf32>
    %301 = vector.shape_cast %300 : vector<256xf32> to vector<1x256xf32>
    %302 = vector.extract_strided_slice %297 {offsets = [16, 0], sizes = [16, 256], strides = [1, 1]} : vector<32x256xf32> to vector<16x256xf32>
    %303 = arith.mulf %289, %302 : vector<16x256xf32>
    %cst_84 = arith.constant dense<0.000000e+00> : vector<256xf32>
    %304 = vector.multi_reduction <add>, %303, %cst_84 [0] : vector<16x256xf32> to vector<256xf32>
    %305 = vector.shape_cast %304 : vector<256xf32> to vector<1x256xf32>
    %306 = tpu.concatenate %301, %305 in 0 : vector<1x256xf32>, vector<1x256xf32> -> vector<2x256xf32>
    %307 = arith.addf %264, %306 : vector<2x256xf32>
    %308 = vector.broadcast %2 : vector<1x256xf32> to vector<16x256xf32>
    %309 = arith.mulf %134, %308 : vector<16x256xf32>
    %cst_85 = arith.constant dense<0.000000e+00> : vector<16x16xf32>
    %310 = tpu.matmul %309, %135, %cst_85 {dimension_numbers = #tpu.dot_dimension_numbers<[1], [0], [0], [1], [0, 0, 1, 1], [], []>} : vector<16x256xf32>, vector<256x16xf32>, vector<16x16xf32> -> vector<16x16xf32>
    %311 = vector.extract_strided_slice %307 {offsets = [0, 0], sizes = [1, 256], strides = [1, 1]} : vector<2x256xf32> to vector<1x256xf32>
    %312 = vector.extract_strided_slice %307 {offsets = [1, 0], sizes = [1, 256], strides = [1, 1]} : vector<2x256xf32> to vector<1x256xf32>
    %313 = arith.addf %10, %311 : vector<1x256xf32>
    %cst_86 = arith.constant 0.000000e+00 : f32
    %cst_87 = arith.constant 1.500000e+01 : f32
    %314 = vector.broadcast %cst_86 : f32 to vector<1x256xf32>
    %315 = arith.maximumf %314, %313 : vector<1x256xf32>
    %316 = vector.broadcast %cst_87 : f32 to vector<1x256xf32>
    %317 = arith.minimumf %316, %315 : vector<1x256xf32>
    %318 = arith.addf %9, %312 : vector<1x256xf32>
    %cst_88 = arith.constant 0.000000e+00 : f32
    %cst_89 = arith.constant 1.500000e+01 : f32
    %319 = vector.broadcast %cst_88 : f32 to vector<1x256xf32>
    %320 = arith.maximumf %319, %318 : vector<1x256xf32>
    %321 = vector.broadcast %cst_89 : f32 to vector<1x256xf32>
    %322 = arith.minimumf %321, %320 : vector<1x256xf32>
    %323 = vector.broadcast %317 : vector<1x256xf32> to vector<16x256xf32>
    %324 = arith.subf %129, %323 : vector<16x256xf32>
    %325 = math.absf %324 : vector<16x256xf32>
    %cst_90 = arith.constant 1.000000e+00 : f32
    %326 = vector.broadcast %cst_90 : f32 to vector<16x256xf32>
    %327 = arith.subf %326, %325 : vector<16x256xf32>
    %cst_91 = arith.constant 0.000000e+00 : f32
    %328 = vector.broadcast %cst_91 : f32 to vector<16x256xf32>
    %329 = arith.maximumf %327, %328 : vector<16x256xf32>
    %330 = vector.broadcast %322 : vector<1x256xf32> to vector<16x256xf32>
    %331 = arith.subf %130, %330 : vector<16x256xf32>
    %332 = math.absf %331 : vector<16x256xf32>
    %cst_92 = arith.constant 1.000000e+00 : f32
    %333 = vector.broadcast %cst_92 : f32 to vector<16x256xf32>
    %334 = arith.subf %333, %332 : vector<16x256xf32>
    %cst_93 = arith.constant 0.000000e+00 : f32
    %335 = vector.broadcast %cst_93 : f32 to vector<16x256xf32>
    %336 = arith.maximumf %334, %335 : vector<16x256xf32>
    %cst_94 = arith.constant dense<0.000000e+00> : vector<16x256xf32>
    %337 = tpu.matmul %310, %336, %cst_94 {dimension_numbers = #tpu.dot_dimension_numbers<[1], [0], [0], [1], [0, 0, 1, 1], [], []>} : vector<16x16xf32>, vector<16x256xf32>, vector<16x256xf32> -> vector<16x256xf32>
    %338 = arith.mulf %329, %337 : vector<16x256xf32>
    %cst_95 = arith.constant dense<0.000000e+00> : vector<256xf32>
    %339 = vector.multi_reduction <add>, %338, %cst_95 [0] : vector<16x256xf32> to vector<256xf32>
    %340 = vector.shape_cast %339 : vector<256xf32> to vector<1x256xf32>
    %c15_i32_96 = arith.constant 15 : i32
    %341 = vector.broadcast %c15_i32_96 : i32 to vector<1x256xi32>
    %342 = arith.cmpi slt, %6, %341 : vector<1x256xi32>
    %343 = arith.extui %342 : vector<1x256xi1> to vector<1x256xi32>
    %344 = arith.sitofp %343 : vector<1x256xi32> to vector<1x256xf32>
    %c15_i32_97 = arith.constant 15 : i32
    %345 = vector.broadcast %c15_i32_97 : i32 to vector<1x256xi32>
    %346 = arith.cmpi slt, %8, %345 : vector<1x256xi32>
    %347 = arith.extui %346 : vector<1x256xi1> to vector<1x256xi32>
    %348 = arith.sitofp %347 : vector<1x256xi32> to vector<1x256xf32>
    %c255_i32_98 = arith.constant 255 : i32
    %349 = tpu.dynamic_rotate %307 by %c255_i32_98 dim 1 : vector<2x256xf32>, i32 -> vector<2x256xf32>
    %350 = arith.subf %349, %307 : vector<2x256xf32>
    %351 = vector.broadcast %344 : vector<1x256xf32> to vector<2x256xf32>
    %352 = arith.mulf %351, %350 : vector<2x256xf32>
    %c240_i32_99 = arith.constant 240 : i32
    %353 = tpu.dynamic_rotate %307 by %c240_i32_99 dim 1 : vector<2x256xf32>, i32 -> vector<2x256xf32>
    %354 = arith.subf %353, %307 : vector<2x256xf32>
    %355 = vector.broadcast %348 : vector<1x256xf32> to vector<2x256xf32>
    %356 = arith.mulf %355, %354 : vector<2x256xf32>
    %357 = arith.mulf %352, %352 : vector<2x256xf32>
    %358 = vector.shape_cast %357 : vector<2x256xf32> to vector<1x2x256xf32>
    %cst_100 = arith.constant dense<0.000000e+00> : vector<1xf32>
    %359 = vector.multi_reduction <add>, %358, %cst_100 [1, 2] : vector<1x2x256xf32> to vector<1xf32>
    %360 = vector.shape_cast %359 : vector<1xf32> to vector<1x1x1xf32>
    %361 = vector.extract %360[0, 0, 0] : f32 from vector<1x1x1xf32>
    %362 = vector.broadcast %361 : f32 to vector<1x1xf32>
    %363 = arith.mulf %356, %356 : vector<2x256xf32>
    %364 = vector.shape_cast %363 : vector<2x256xf32> to vector<1x2x256xf32>
    %cst_101 = arith.constant dense<0.000000e+00> : vector<1xf32>
    %365 = vector.multi_reduction <add>, %364, %cst_101 [1, 2] : vector<1x2x256xf32> to vector<1xf32>
    %366 = vector.shape_cast %365 : vector<1xf32> to vector<1x1x1xf32>
    %367 = vector.extract %366[0, 0, 0] : f32 from vector<1x1x1xf32>
    %368 = vector.broadcast %367 : f32 to vector<1x1xf32>
    %369 = arith.addf %362, %368 : vector<1x1xf32>
    %370 = vector.extract_strided_slice %356 {offsets = [0, 0], sizes = [1, 256], strides = [1, 1]} : vector<2x256xf32> to vector<1x256xf32>
    %cst_102 = arith.constant 1.000000e+00 : f32
    %371 = vector.broadcast %cst_102 : f32 to vector<1x256xf32>
    %372 = arith.addf %371, %370 : vector<1x256xf32>
    %373 = vector.extract_strided_slice %352 {offsets = [1, 0], sizes = [1, 256], strides = [1, 1]} : vector<2x256xf32> to vector<1x256xf32>
    %cst_103 = arith.constant 1.000000e+00 : f32
    %374 = vector.broadcast %cst_103 : f32 to vector<1x256xf32>
    %375 = arith.addf %374, %373 : vector<1x256xf32>
    %376 = arith.mulf %372, %375 : vector<1x256xf32>
    %377 = vector.extract_strided_slice %352 {offsets = [0, 0], sizes = [1, 256], strides = [1, 1]} : vector<2x256xf32> to vector<1x256xf32>
    %378 = vector.extract_strided_slice %356 {offsets = [1, 0], sizes = [1, 256], strides = [1, 1]} : vector<2x256xf32> to vector<1x256xf32>
    %379 = arith.mulf %377, %378 : vector<1x256xf32>
    %380 = arith.subf %376, %379 : vector<1x256xf32>
    %381 = arith.mulf %348, %344 : vector<1x256xf32>
    %cst_104 = arith.constant 0.000000e+00 : f32
    %382 = vector.broadcast %cst_104 : f32 to vector<1x256xf32>
    %383 = arith.subf %382, %380 : vector<1x256xf32>
    %cst_105 = arith.constant 0.000000e+00 : f32
    %384 = vector.broadcast %cst_105 : f32 to vector<1x256xf32>
    %385 = arith.maximumf %383, %384 : vector<1x256xf32>
    %386 = arith.mulf %381, %385 : vector<1x256xf32>
    %387 = vector.shape_cast %386 : vector<1x256xf32> to vector<1x1x256xf32>
    %cst_106 = arith.constant dense<0.000000e+00> : vector<1xf32>
    %388 = vector.multi_reduction <add>, %387, %cst_106 [1, 2] : vector<1x1x256xf32> to vector<1xf32>
    %389 = vector.shape_cast %388 : vector<1xf32> to vector<1x1x1xf32>
    %390 = vector.extract %389[0, 0, 0] : f32 from vector<1x1x1xf32>
    %391 = vector.broadcast %390 : f32 to vector<1x1xf32>
    %c0_i32_107 = arith.constant 0 : i32
    %392 = vector.broadcast %c0_i32_107 : i32 to vector<1x256xi32>
    %393 = arith.cmpi eq, %4, %392 : vector<1x256xi32>
    %394 = arith.extui %393 : vector<1x256xi1> to vector<1x256xi32>
    %395 = arith.sitofp %394 : vector<1x256xi32> to vector<1x256xf32>
    %396 = vector.broadcast %99 : vector<1x1xf32> to vector<1x256xf32>
    %397 = arith.mulf %396, %395 : vector<1x256xf32>
    %c1_i32_108 = arith.constant 1 : i32
    %398 = vector.broadcast %c1_i32_108 : i32 to vector<1x256xi32>
    %399 = arith.cmpi eq, %4, %398 : vector<1x256xi32>
    %400 = arith.extui %399 : vector<1x256xi1> to vector<1x256xi32>
    %401 = arith.sitofp %400 : vector<1x256xi32> to vector<1x256xf32>
    %402 = vector.broadcast %391 : vector<1x1xf32> to vector<1x256xf32>
    %403 = arith.mulf %402, %401 : vector<1x256xf32>
    %404 = arith.addf %397, %403 : vector<1x256xf32>
    %c2_i32_109 = arith.constant 2 : i32
    %405 = vector.broadcast %c2_i32_109 : i32 to vector<1x256xi32>
    %406 = arith.cmpi eq, %4, %405 : vector<1x256xi32>
    %407 = arith.extui %406 : vector<1x256xi1> to vector<1x256xi32>
    %408 = arith.sitofp %407 : vector<1x256xi32> to vector<1x256xf32>
    %409 = vector.broadcast %369 : vector<1x1xf32> to vector<1x256xf32>
    %410 = arith.mulf %409, %408 : vector<1x256xf32>
    %411 = arith.addf %404, %410 : vector<1x256xf32>
    %412 = tpu.concatenate %340, %307, %411 in 0 : vector<1x256xf32>, vector<2x256xf32>, vector<1x256xf32> -> vector<4x256xf32>
    %c0_110 = arith.constant 0 : index
    %c0_111 = arith.constant 0 : index
    %c0_112 = arith.constant 0 : index
    %413 = vector.load %arg7[%c0_110, %c0_111, %c0_112] : memref<1x4x256xf32, #tpu.memory_space<vmem>>, vector<1x4x256xf32>
    %414 = vector.shape_cast %413 : vector<1x4x256xf32> to vector<4x256xf32>
    %415 = vector.shape_cast %412 : vector<4x256xf32> to vector<1x4x256xf32>
    tpu.vector_store %arg7[%c0_110, %c0_111, %c0_112], %415 {strides = array<i32>} : memref<1x4x256xf32, #tpu.memory_space<vmem>>, vector<1x4x256xf32>,
    return
  }
  func.func @transform_0(%arg0: i32) -> (i32, i32, i32) {
    %c0_i32 = arith.constant 0 : i32
    %c0_i32_0 = arith.constant 0 : i32
    %c0_i32_1 = arith.constant 0 : i32
    return %arg0, %c0_i32, %c0_i32_0 : i32, i32, i32
  }
  func.func @transform_1(%arg0: i32) -> (i32, i32) {
    %c0_i32 = arith.constant 0 : i32
    %c0_i32_0 = arith.constant 0 : i32
    %c0_i32_1 = arith.constant 0 : i32
    return %c0_i32, %c0_i32_0 : i32, i32
  }
  func.func @transform_2(%arg0: i32) -> (i32, i32) {
    %c0_i32 = arith.constant 0 : i32
    %c0_i32_0 = arith.constant 0 : i32
    %c0_i32_1 = arith.constant 0 : i32
    return %c0_i32, %c0_i32_0 : i32, i32
  }
  func.func @transform_3(%arg0: i32) -> (i32, i32) {
    %c0_i32 = arith.constant 0 : i32
    %c0_i32_0 = arith.constant 0 : i32
    %c0_i32_1 = arith.constant 0 : i32
    return %c0_i32, %c0_i32_0 : i32, i32
  }
  func.func @transform_4(%arg0: i32) -> (i32, i32) {
    %c0_i32 = arith.constant 0 : i32
    %c0_i32_0 = arith.constant 0 : i32
    %c0_i32_1 = arith.constant 0 : i32
    return %c0_i32, %c0_i32_0 : i32, i32
  }
  func.func @transform_5(%arg0: i32) -> (i32, i32) {
    %c0_i32 = arith.constant 0 : i32
    %c0_i32_0 = arith.constant 0 : i32
    %c0_i32_1 = arith.constant 0 : i32
    return %c0_i32, %c0_i32_0 : i32, i32
  }
  func.func @transform_6(%arg0: i32) -> (i32, i32, i32) {
    %c0_i32 = arith.constant 0 : i32
    %c0_i32_0 = arith.constant 0 : i32
    %c0_i32_1 = arith.constant 0 : i32
    return %arg0, %c0_i32, %c0_i32_0 : i32, i32, i32
  }
}

</mosaic_0001>

<bundles_post_ra>
// kernel: squeeze.4
= control target key start
LH: loop header
LB: loop body
LE: loop exit
PB: predicated region body
PF: predicated region fallthrough
CT: control target
= control target key end

     0   :  { %s149_s0 = inlined_call_operand.vmem [shape: f32[2,256], index: 0, kind: input, shape index: {}]   ;;  %s150_s1 = inlined_call_operand.hbm [shape: f32[2,1,16,16], index: 1, kind: output, shape index: {}]  }
   0x1   :  { %v71_v0 = vld [vmem:[%s149_s0 + $0x2] sm:$0x3]  ;;  %v9_v1 = vld [vmem:[%s149_s0] sm:$0x3] }
   0x2   :  { %8 = vst [vmem:[#allocation2 + $0x8] sm:$0x3] %v71_v0  ;;  %10 = vst [vmem:[#allocation2] sm:$0x3] %v9_v1 }
   0x3   :  { %2 = vsyncpa [#allocation1], 0  ;;  %vm12_vm0 = vcmask 130048   ;;  %s104_s0 = smov 112   ;;  %s105_s10 = smov 80  }
   0x4   :  { %s106_s11 = smov 96   ;;  %s107_s12 = smov 64  }
   0x5   :  { %s108_s13 = smov 48   ;;  %s109_s14 = smov 32  }
   0x6   :  { %s110_s15 = smov 16   ;;  %s111_s16 = smov [#allocation0]  }
   0x7   :  { %s65_s17 = sshll.u32 %s111_s16, 4  ;;  %s66_s17 = int_to_ptr.vmem [resolvable:$true] %s65_s17 }
   0x8   :  { %s80_s18 = scalar_lea.vmem %s66_s17, 512  ;;  %p85_p1 = scmp.lt.s32.totalorder %s66_s17, %s66_s17 }
   0x9   :  { %v19_v2 = vld.sshfl [vmem:[#allocation2] sm:$0xff pattern:$0x99999180]   ;;  %p81_p0 = scmp.ne.s32.totalorder %s66_s17, %s80_s18  ;;  %p86_p2 = scmp.lt.s32.totalorder %s80_s18, %s80_s18 }
   0xa   :  { %v11_v3 = vld [vmem:[#allocation2] sm:$0x3]   ;;  %20 = vrot.lane.b32.xlu0 %v19_v2, %s104_s0  ;;  %32 = vrot.lane.b32.xlu1 %v19_v2, %s105_s10  ;;  %v15_v4 = vld [vmem:[#allocation2 + $0x8] sm:$0x3]  }
   0xb   :  { %13 = vst.msk [vmem:[#allocation0] ss:$16 sm:$0x3] %vm12_vm0, %v11_v3   ;;  %18 = vst.msk [vmem:[#allocation0 + $0x8] ss:$16 sm:$0x3] %vm12_vm0, %v15_v4   ;;  %p87_p3 = por %p86_p2, %p85_p1 }
   0xd   :  { %p88_p4 = pnand %p87_p3, %p81_p0 }
   0xe   :  { %26 = vrot.lane.b32.xlu0 %v19_v2, %s106_s11  ;;  %38 = vrot.lane.b32.xlu1 %v19_v2, %s107_s12 }
  0x12   :  { %44 = vrot.lane.b32.xlu0 %v19_v2, %s108_s13  ;;  %50 = vrot.lane.b32.xlu1 %v19_v2, %s109_s14 }
  0x16   :  { %56 = vrot.lane.b32.xlu0 %v19_v2, %s110_s15 }
  0x7c   :  { %v21_v5 = vpop.permute.xlu0 %20   ;;  %v33_v6 = vpop.permute.xlu1 %32  }
  0x7d   :  { %24 = vst.msk [vmem:[#allocation0 + $0x1] ss:$8 sm:$0xf] %vm12_vm0, %v21_v5   ;;  %36 = vst.msk [vmem:[#allocation0 + $0x3] ss:$8 sm:$0xf] %vm12_vm0, %v33_v6  }
  0x80   :  { %v27_v7 = vpop.permute.xlu0 %26   ;;  %v39_v8 = vpop.permute.xlu1 %38  }
  0x81   :  { %30 = vst.msk [vmem:[#allocation0 + $0x2] ss:$8 sm:$0xf] %vm12_vm0, %v27_v7   ;;  %42 = vst.msk [vmem:[#allocation0 + $0x4] ss:$8 sm:$0xf] %vm12_vm0, %v39_v8  }
  0x84   :  { %v45_v9 = vpop.permute.xlu0 %44   ;;  %v51_v10 = vpop.permute.xlu1 %50  }
  0x85   :  { %48 = vst.msk [vmem:[#allocation0 + $0x5] ss:$8 sm:$0xf] %vm12_vm0, %v45_v9   ;;  %54 = vst.msk [vmem:[#allocation0 + $0x6] ss:$8 sm:$0xf] %vm12_vm0, %v51_v10  }
  0x88   :  { %v57_v11 = vpop.permute.xlu0 %56  }
  0x89   :  { %60 = vst.msk [vmem:[#allocation0 + $0x7] ss:$8 sm:$0xf] %vm12_vm0, %v57_v11  }
  0x8a   :  { %91 = shalt.err (!%p88_p4)
}
  0x8b   :  { %s92_s21 = scalar_lea.hbm %s150_s1, 512 }
  0x8c   :  { %p93_p5 = scmp.ne.s32.totalorder %s150_s1, %s92_s21  ;;  %p96_p6 = scmp.lt.u32.totalorder %s92_s21, %s150_s1 }
  0x8e   :  { %p98_p7 = pnand %p96_p6, %p93_p5 }
  0x90   :  { %101 = shalt.err (!%p98_p7)
}
  0x91   :  { %68 = dma.vmem_to_hbm [thread:$0]  %s66_s17, 512, %s150_s1, [#allocation1]  }
  0x92   :  { %102 = dma.done.wait [#allocation1], 512  }
  0x93   :  { %103 = vsyncadd [#allocation1], 4294966784 }
  0x94   :  { %70 = vsyncpa [#allocation1], 1 }

// kernel: registration_forward.1
= control target key start
LH: loop header
LB: loop body
LE: loop exit
PB: predicated region body
PF: predicated region fallthrough
CT: control target
= control target key end

     0   :  { %s3212_s21 = smov 0   ;;  %s4107_s0 = inlined_call_operand.vmem [shape: f32[2,2,256], index: 0, kind: input, shape index: {}]   ;;  %s4108_s1 = inlined_call_operand.vmem [shape: f32[16,18], index: 1, kind: input, shape index: {}]   ;;  %s4109_s2 = inlined_call_operand.vmem [shape: f32[16,1], index: 2, kind: input, shape index: {}]   ;;  %s4110_s3 = inlined_call_operand.vmem [shape: f32[2,72], index: 3, kind: input, shape index: {}]   ;;  %s4111_s4 = inlined_call_operand.vmem [shape: f32[2,18], index: 4, kind: input, shape index: {}]   ;;  %s4112_s5 = inlined_call_operand.vmem [shape: f32[256,16], index: 5, kind: input, shape index: {}]   ;;  %s4113_s6 = inlined_call_operand.vmem [shape: f32[2,4,256], index: 6, kind: output, shape index: {}]  }
   0x1 LB: > { %s2656_s22 = sadd.s32 4294967295, %s3165_s21   ;;  %p2660_p0 = scmp.ge.s32.totalorder %s3165_s21, 1  ;;  %s3165_s21 = sphi %s3212_s21, %s16_s21  }
   0x2   : > { %p212_p1 = scmp.lt.s32.totalorder %s3165_s21, 3 }
   0x4   : > { %p213_p2 = pnand %p2660_p0, %p212_p1 }
   0x5   : > { %p242_p3 = scmp.lt.s32.totalorder (!%p213_p2), %s2656_s22, 1  ;;  %v253_v0 = vlaneseq (!%p213_p2)  ;;  %v3167_v1 = vmov (!%p213_p2), 0.0   ;;  %s3168_s27 = smov (!%p213_p2), 16   ;;  %v432_v5 = vld [vmem:[%s4109_s2] sm:$0xff] (!%p213_p2)  ;;  %v433_v6 = vld [vmem:[%s4109_s2 + $0x8] sm:$0xff] (!%p213_p2)  ;;  %v3176_v7 = vmov (!%p213_p2), 0  }
   0x6   : > { %216 = sbr.rel (%p213_p2) target bundleno = 3332 (0xd04), region = 44  ;;  %521 = vmatprep.mubr.f32.mxu0 (!%p213_p2), %v3167_v1  ;;  %673 = vmatprep.mubr.f32.mxu1 (!%p213_p2), %v3167_v1  ;;  %s3169_s28 = smov (!%p213_p2), 127   ;;  %vm415_vm11 = vcmask (!%p213_p2), 1041408   ;;  %vm418_vm14 = vcmask (!%p213_p2), 1043456   ;;  %vm421_vm15 = vcmask (!%p213_p2), 1045504  }
   0x7   : > { %v3224_v2 = vshrl.u32 (!%p213_p2), %v253_v0, 7  ;;  %s3170_s29 = smov (!%p213_p2), 15   ;;  %s3171_s30 = smov (!%p213_p2), 113   ;;  %3155 = vset.pattern.permute.xlu0 (!%p213_p2), %v3176_v7  ;;  %3156 = vset.pattern.permute.xlu1 (!%p213_p2), %v3176_v7  ;;  %v3277_v10 = vand.u32 (!%p213_p2), 127, %v253_v0 }
   0x8   : > { %s3172_s7 = smov (!%p213_p2), 17   ;;  %s3173_s8 = smov (!%p213_p2), 1  }
   0x9   : > { %s3174_s9 = smov (!%p213_p2), 112   ;;  %s3175_s10 = smov (!%p213_p2), 111   ;;  %v255_v13 = vadd.s32 (!%p213_p2), 128, %v3277_v10  ;;  %v3281_v14 = vand.u32 (!%p213_p2), 15, %v3277_v10  ;;  %v3284_v15 = vshrl.u32 (!%p213_p2), %v3277_v10, 4  ;;  %vm320_vm6 = vcmp.lt.s32.totalorder (!%p213_p2), %v3277_v10, 16 }
   0xa   : > { %vm347_vm7 = vcmp.lt.s32.totalorder (!%p213_p2), %v3277_v10, 127  ;;  %vm356_vm8 = vcmp.lt.s32.totalorder (!%p213_p2), %v3277_v10, 113  ;;  %vm329_vm9 = vcmp.lt.s32.totalorder (!%p213_p2), %v3277_v10, 15  ;;  %vm311_vm10 = vcmp.lt.s32.totalorder (!%p213_p2), %v3277_v10, 17 }
   0xb   : > { %v3286_v16 = vshrl.u32 (!%p213_p2), %v255_v13, 4  ;;  %v3288_v17 = vand.u32 (!%p213_p2), 15, %v255_v13  ;;  %vm270_vm0 = vcmp.le.s32.totalorder (!%p213_p2), %v3281_v14, 14  ;;  %vm276_vm1 = vcmp.ge.s32.totalorder (!%p213_p2), %v3284_v15, 1 }
   0xc   : > { %v3296_v20 = vsel (!%p213_p2), %vm270_vm0, 1.0, %v3167_v1  ;;  %vm264_vm5 = vcmp.ge.s32.totalorder (!%p213_p2), %v3281_v14, 1  ;;  %v3302_v23 = vsel (!%p213_p2), %vm276_vm1, 1.0, %v3167_v1  ;;  %vm338_vm12 = vcmp.lt.s32.totalorder (!%p213_p2), %v3277_v10, 1 }
   0xd   : > { %s4115_s22 = smov (!%p242_p3, %s2656_s22), 1  ;;  %vm265_vm2 = vcmp.ge.s32.totalorder %v3288_v17, 1  ;;  %vm283_vm3 = vcmp.le.s32.totalorder %v3286_v16, 14  ;;  %vm271_vm4 = vcmp.le.s32.totalorder %v3288_v17, 14  ;;  %v3316_v27 = vmul.f32 %v3302_v23, %v3296_v20 }
   0xe   : > { %s2708_s23 = sshll.u32 %s4115_s22, 2  ;;  %v3305_v24 = vsel %vm265_vm2, 1.0, %v3167_v1  ;;  %v3308_v25 = vsel %vm283_vm3, 1.0, %v3167_v1  ;;  %v3312_v26 = vsel %vm271_vm4, 1.0, %v3167_v1  ;;  %v3320_v28 = vsel %vm264_vm5, 1.0, %v3167_v1  ;;  %s2709_s12 = sshll.u32 %s4115_s22, 3 }
   0xf   : > { %s3230_s26 = scalar_lea.vmem %s4107_s0, %s2708_s23  ;;  %v3328_v32 = vmul.f32 %v3302_v23, %v3320_v28  ;;  %v3335_v35 = vmul.f32 %v3308_v25, %v3305_v24  ;;  %vm365_vm13 = vcmp.lt.s32.totalorder %v3277_v10, 112  ;;  %v3366_v54 = vmul.f32 %v3308_v25, %v3312_v26  ;;  %s251_s15 = scalar_lea.vmem %s4113_s6, %s2709_s12 }
  0x10   : > { %v3233_v3 = vld.sshfl [vmem:[%s3230_s26] sm:$0x33 pattern:$0x76325410]  ;;  %vm374_vm0 = vcmp.lt.s32.totalorder %v3277_v10, 111  ;;  %vm444_vm1 = vcmask 146432   ;;  %vm907_vm3 = vcmp.eq.s32.totalorder %v3224_v2, %v3284_v15 }
  0x11   : > { %316 = vrot.lane.b32.xlu1 %v3233_v3, %s3168_s27  ;;  %343 = vrot.lane.b32.xlu0 %v3233_v3, %s3169_s28  ;;  %v3241_v4 = vcombine.high %v3233_v3, %v3233_v3  ;;  %vm605_vm2 = vcmask 588800   ;;  %vm1120_vm5 = vcmask 130048  }
  0x15   : > { %325 = vrot.lane.b32.xlu0 %v3233_v3, %s3170_s29  ;;  %318 = vrot.lane.b32.xlu1 %v3241_v4, %s3168_s27 }
  0x19   : > { %327 = vrot.lane.b32.xlu1 %v3241_v4, %s3170_s29  ;;  %345 = vrot.lane.b32.xlu0 %v3241_v4, %s3169_s28 }
  0x1d   : > { %354 = vrot.lane.b32.xlu1 %v3241_v4, %s3171_s30  ;;  %352 = vrot.lane.b32.xlu0 %v3233_v3, %s3171_s30 }
  0x21   : > { %309 = vrot.lane.b32.xlu1 %v3241_v4, %s3172_s7  ;;  %307 = vrot.lane.b32.xlu0 %v3233_v3, %s3172_s7 }
  0x25   : > { %336 = vrot.lane.b32.xlu1 %v3241_v4, %s3173_s8  ;;  %334 = vrot.lane.b32.xlu0 %v3233_v3, %s3173_s8 }
  0x29   : > { %363 = vrot.lane.b32.xlu1 %v3241_v4, %s3174_s9  ;;  %361 = vrot.lane.b32.xlu0 %v3233_v3, %s3174_s9 }
  0x2d   : > { %372 = vrot.lane.b32.xlu1 %v3241_v4, %s3175_s10  ;;  %370 = vrot.lane.b32.xlu0 %v3233_v3, %s3175_s10 }
  0x31   : > { %436 = vperm.xlu0 %3155, %v432_v5   ;;  %441 = vperm.xlu1 %3156, %v433_v6  }
  0x83   : > { %v317_v8 = vpop.permute.xlu1 %316  ;;  %v344_v9 = vpop.permute.xlu0 %343 }
  0x87   : > { %v326_v11 = vpop.permute.xlu0 %325  ;;  %v319_v12 = vpop.permute.xlu1 %318 }
  0x88   : > { %v322_v29 = vsel %vm320_vm6, %v319_v12, %v317_v8  ;;  %v321_v38 = vsel %vm320_vm6, %v317_v8, %v319_v12 }
  0x89   : > { %v323_v39 = vmul.f32 %v3302_v23, %v322_v29  ;;  %v382_v59 = vrot.slane %v321_v38, 6 }
  0x8b   : > { %v328_v18 = vpop.permute.xlu1 %327  ;;  %v346_v19 = vpop.permute.xlu0 %345  ;;  %v381_v5 = vrot.slane %v323_v39, 6 }
  0x8c   : > { %v348_v30 = vsel %vm347_vm7, %v344_v9, %v346_v19  ;;  %v349_v34 = vsel %vm347_vm7, %v346_v19, %v344_v9  ;;  %v330_v42 = vsel %vm329_vm9, %v326_v11, %v328_v18  ;;  %v331_v48 = vsel %vm329_vm9, %v328_v18, %v326_v11 }
  0x8d   : > { %v350_v40 = vmul.f32 %v3296_v20, %v348_v30  ;;  %v351_v43 = vmul.f32 %v3312_v26, %v349_v34  ;;  %v333_v55 = vmul.f32 %v3312_v26, %v330_v42  ;;  %v332_v60 = vmul.f32 %v331_v48, %v3316_v27  ;;  %v430_v48 = vld [vmem:[%s4108_s1] sm:$0xff] }
  0x8f   : > { %v355_v21 = vpop.permute.xlu1 %354  ;;  %v353_v22 = vpop.permute.xlu0 %352  ;;  %v399_v56 = vrot.slane %v350_v40, 6  ;;  %v400_v61 = vrot.slane %v351_v43, 6  ;;  %v388_v18 = vrot.slane %v333_v55, 4  ;;  %v387_v29 = vrot.slane %v332_v60, 4 }
  0x90   : > { %v357_v36 = vsel %vm356_vm8, %v353_v22, %v355_v21  ;;  %v358_v37 = vsel %vm356_vm8, %v355_v21, %v353_v22 }
  0x91   : > { %v359_v44 = vmul.f32 %v3320_v28, %v357_v36  ;;  %v360_v49 = vmul.f32 %v358_v37, %v3335_v35  ;;  %v424_v22 = vsel %vm415_vm11, %v3233_v3, %v399_v56 }
  0x93   : > { %v310_v31 = vpop.permute.xlu1 %309  ;;  %v308_v33 = vpop.permute.xlu0 %307  ;;  %v405_v62 = vrot.slane %v359_v44, 4  ;;  %v406_v6 = vrot.slane %v360_v49, 4  ;;  %v431_v49 = vld [vmem:[%s4108_s1 + $0x8] sm:$0xff] }
  0x94   : > { %v312_v41 = vsel %vm311_vm10, %v308_v33, %v310_v31  ;;  %v313_v45 = vsel %vm311_vm10, %v310_v31, %v308_v33  ;;  %v425_v33 = vsel %vm415_vm11, %v3241_v4, %v400_v61 }
  0x95   : > { %v315_v52 = vmul.f32 %v3305_v24, %v312_v41  ;;  %v314_v57 = vmul.f32 %v313_v45, %v3328_v32  ;;  %v426_v36 = vsel %vm418_vm14, %v424_v22, %v405_v62  ;;  %v427_v38 = vsel %vm418_vm14, %v425_v33, %v406_v6 }
  0x97   : > { %v337_v46 = vpop.permute.xlu1 %336  ;;  %v335_v47 = vpop.permute.xlu0 %334  ;;  %v417_v13 = vsel %vm415_vm11, %v315_v52, %v382_v59  ;;  %v416_v21 = vsel %vm415_vm11, %v314_v57, %v381_v5 }
  0x98   : > { %v339_v50 = vsel %vm338_vm12, %v335_v47, %v337_v46  ;;  %v340_v51 = vsel %vm338_vm12, %v337_v46, %v335_v47  ;;  %v420_v37 = vsel %vm418_vm14, %v417_v13, %v388_v18  ;;  %v419_v42 = vsel %vm418_vm14, %v416_v21, %v387_v29 }
  0x99   : > { %v342_v53 = vmul.f32 %v3305_v24, %v339_v50  ;;  %v341_v58 = vmul.f32 %v3320_v28, %v340_v51 }
  0x9b   : > { %v364_v63 = vpop.permute.xlu1 %363  ;;  %v362_v0 = vpop.permute.xlu0 %361  ;;  %v394_v9 = vrot.slane %v342_v53, 2  ;;  %v393_v19 = vrot.slane %v341_v58, 2 }
  0x9c   : > { %v366_v7 = vsel %vm365_vm13, %v362_v0, %v364_v63  ;;  %v367_v8 = vsel %vm365_vm13, %v364_v63, %v362_v0 }
  0x9d   : > { %v369_v11 = vmul.f32 %v3308_v25, %v367_v8  ;;  %v411_v12 = vrot.slane %v366_v7, 2  ;;  %v423_v3 = vsel %vm421_vm15, %v420_v37, %v394_v9  ;;  %v422_v45 = vsel %vm421_vm15, %v419_v42, %v393_v19 }
  0x9f   : > { %v412_v30 = vrot.slane %v369_v11, 2  ;;  %v373_v31 = vpop.permute.xlu1 %372  ;;  %v371_v34 = vpop.permute.xlu0 %370  ;;  %v428_v40 = vsel %vm421_vm15, %v426_v36, %v411_v12 }
  0xa0   : > { %v376_v39 = vsel %vm374_vm0, %v373_v31, %v371_v34  ;;  %v375_v4 = vsel %vm374_vm0, %v371_v34, %v373_v31  ;;  %v2926_v46 = vpack.c.bf16 %v428_v40, %v422_v45 }
  0xa1   : > { %v429_v41 = vsel %vm421_vm15, %v427_v38, %v412_v30  ;;  %v378_v44 = vmul.f32 %v376_v39, %v3366_v54  ;;  %v377_v47 = vmul.f32 %v3296_v20, %v375_v4 }
  0xa2   : > { %v2924_v43 = vpack.c.bf16 %v429_v41, %v423_v3 }
  0xa4   : > { %2925 = vmatprep.subr.bf16.mxu0 %v2924_v43 }
  0xa5   : > { %2927 = vmatpush1.bf16.msra.mxu0 %v2926_v46 }
  0xa6   : > { %2671 = vmatprep.subr.msk.mxu0 %vm415_vm11, %v378_v44 }
  0xa9   : > { %2672 = vmatpush1.msk.msra.mxu0 %vm415_vm11, %v377_v47 }
  0xaa   : > { %2673 = vmatmul.mubr.msk.f32.vlgmr.msra.gmra.mrb[0].mxu0 %vm444_vm1, %v430_v48 }
  0xab   : > { %527 = vmatprep.mubr.f32.mxu0 %v3167_v1 }
  0xae   : > { %2674 = vmatmul.mubr.msk.f32.gmra.mrb[2].mxu0 %vm444_vm1, %v431_v49 }
  0xaf   : > { %895 = vmatprep.mubr.f32.mxu0 %v3167_v1 }
  0xb0   : > { %v437_v51 = vpop.permute.xlu0 %436  ;;  %v442_v53 = vpop.permute.xlu1 %441 }
 0x17d   : > { %v523_v50 = vpop.f32.mrb[0].mxu0 }
 0x17e   : > { %v525_v52 = vpop.f32.mrb[1].mxu0  ;;  %v524_v55 = vadd.f32 %v523_v50, %v437_v51 }
 0x17f   : > { %v526_v56 = vadd.f32 %v525_v52, %v437_v51 }
 0x180   : > { %v534_v61 = vmax.f32 %v524_v55, 0.0 }
 0x181   : > { %v529_v57 = vpop.f32.mrb[2].mxu0  ;;  %v535_v63 = vmax.f32 %v526_v56, 0.0 }
 0x182   : > { %v530_v58 = vadd.f32 %v529_v57, %v442_v53  ;;  %v531_v59 = vpop.f32.mrb[3].mxu0 }
 0x183   : > { %v532_v60 = vadd.f32 %v531_v59, %v442_v53 }
 0x184   : > { %v536_v62 = vmax.f32 %v530_v58, 0.0 }
 0x185   : > { %v537_v0 = vmax.f32 %v532_v60, 0.0 }
 0x186   : > { %v538_v5 = vsub.f32 %v534_v61, %v536_v62 }
 0x187   : > { %v539_v6 = vsub.f32 %v535_v63, %v537_v0 }
 0x188   : > { %541 = vrot.lane.b32.xlu1 %v538_v5, %s3172_s7 }
 0x189   : > { %543 = vrot.lane.b32.xlu0 %v539_v6, %s3172_s7 }
 0x18c   : > { %549 = vrot.lane.b32.xlu1 %v538_v5, %s3168_s27 }
 0x18d   : > { %551 = vrot.lane.b32.xlu0 %v539_v6, %s3168_s27 }
 0x190   : > { %557 = vrot.lane.b32.xlu1 %v538_v5, %s3170_s29 }
 0x191   : > { %559 = vrot.lane.b32.xlu0 %v539_v6, %s3170_s29 }
 0x194   : > { %565 = vrot.lane.b32.xlu1 %v538_v5, %s3173_s8 }
 0x195   : > { %567 = vrot.lane.b32.xlu0 %v539_v6, %s3173_s8 }
 0x198   : > { %573 = vrot.lane.b32.xlu1 %v538_v5, %s3169_s28 }
 0x199   : > { %575 = vrot.lane.b32.xlu0 %v539_v6, %s3169_s28 }
 0x19c   : > { %581 = vrot.lane.b32.xlu1 %v538_v5, %s3171_s30 }
 0x19d   : > { %583 = vrot.lane.b32.xlu0 %v539_v6, %s3171_s30 }
 0x1a0   : > { %589 = vrot.lane.b32.xlu1 %v538_v5, %s3174_s9 }
 0x1a1   : > { %591 = vrot.lane.b32.xlu0 %v539_v6, %s3174_s9 }
 0x1a4   : > { %597 = vrot.lane.b32.xlu1 %v538_v5, %s3175_s10 }
 0x1a5   : > { %599 = vrot.lane.b32.xlu0 %v539_v6, %s3175_s10 }
 0x1fa   : > { %v542_v7 = vpop.permute.xlu1 %541 }
 0x1fb   : > { %v544_v8 = vpop.permute.xlu0 %543 }
 0x1fc   : > { %v545_v9 = vsel %vm311_vm10, %v542_v7, %v544_v8  ;;  %v546_v11 = vsel %vm311_vm10, %v544_v8, %v542_v7 }
 0x1fd   : > { %v548_v18 = vmul.f32 %v3305_v24, %v545_v9  ;;  %v547_v22 = vmul.f32 %v546_v11, %v3328_v32 }
 0x1fe   : > { %v550_v12 = vpop.permute.xlu1 %549 }
 0x1ff   : > { %v552_v13 = vpop.permute.xlu0 %551 }
 0x200   : > { %v554_v19 = vsel %vm320_vm6, %v552_v13, %v550_v12  ;;  %v553_v21 = vsel %vm320_vm6, %v550_v12, %v552_v13 }
 0x201   : > { %v555_v29 = vmul.f32 %v3302_v23, %v554_v19  ;;  %v2928_v30 = vpack.c.bf16 %v553_v21, %v548_v18  ;;  %v540_v19 = vld [vmem:[%s4110_s3] sm:$0x3] }
 0x202   : > { %v558_v31 = vpop.permute.xlu1 %557 }
 0x203   : > { %v560_v33 = vpop.permute.xlu0 %559  ;;  %2929 = vmatprep.subr.bf16.mxu1 %v2928_v30  ;;  %v2930_v34 = vpack.c.bf16 %v555_v29, %v547_v22 }
 0x204   : > { %v561_v36 = vsel %vm329_vm9, %v558_v31, %v560_v33  ;;  %v562_v37 = vsel %vm329_vm9, %v560_v33, %v558_v31 }
 0x205   : > { %2931 = vmatpush1.bf16.msra.mxu1 %v2930_v34  ;;  %v563_v41 = vmul.f32 %v562_v37, %v3316_v27  ;;  %v564_v42 = vmul.f32 %v3312_v26, %v561_v36 }
 0x206   : > { %v566_v38 = vpop.permute.xlu1 %565 }
 0x207   : > { %v568_v39 = vpop.permute.xlu0 %567 }
 0x208   : > { %v569_v40 = vsel %vm338_vm12, %v566_v38, %v568_v39  ;;  %v570_v3 = vsel %vm338_vm12, %v568_v39, %v566_v38 }
 0x209   : > { %v571_v43 = vmul.f32 %v3320_v28, %v570_v3  ;;  %v572_v4 = vmul.f32 %v3305_v24, %v569_v40 }
 0x20a   : > { %v574_v44 = vpop.permute.xlu1 %573 }
 0x20b   : > { %v576_v45 = vpop.permute.xlu0 %575  ;;  %v2932_v46 = vpack.c.bf16 %v572_v4, %v564_v42  ;;  %v2934_v47 = vpack.c.bf16 %v571_v43, %v563_v41 }
 0x20c   : > { %v577_v48 = vsel %vm347_vm7, %v574_v44, %v576_v45  ;;  %v578_v49 = vsel %vm347_vm7, %v576_v45, %v574_v44 }
 0x20d   : > { %v579_v50 = vmul.f32 %v3296_v20, %v577_v48  ;;  %v580_v51 = vmul.f32 %v3312_v26, %v578_v49  ;;  %2933 = vmatprep.subr.bf16.mxu1 %v2932_v46 }
 0x20e   : > { %2935 = vmatpush1.bf16.msra.mxu1 %v2934_v47  ;;  %v582_v52 = vpop.permute.xlu1 %581 }
 0x20f   : > { %v584_v53 = vpop.permute.xlu0 %583  ;;  %v2936_v55 = vpack.c.bf16 %v580_v51, %v539_v6  ;;  %v2938_v56 = vpack.c.bf16 %v579_v50, %v538_v5 }
 0x210   : > { %v586_v57 = vsel %vm356_vm8, %v584_v53, %v582_v52  ;;  %v585_v59 = vsel %vm356_vm8, %v582_v52, %v584_v53 }
 0x211   : > { %2937 = vmatprep.subr.bf16.mxu1 %v2936_v55  ;;  %v588_v62 = vmul.f32 %v586_v57, %v3335_v35  ;;  %v587_v5 = vmul.f32 %v3320_v28, %v585_v59 }
 0x212   : > { %2939 = vmatpush1.bf16.msra.mxu1 %v2938_v56  ;;  %v590_v58 = vpop.permute.xlu1 %589 }
 0x213   : > { %v592_v60 = vpop.permute.xlu0 %591 }
 0x214   : > { %v594_v61 = vsel %vm365_vm13, %v592_v60, %v590_v58  ;;  %v593_v63 = vsel %vm365_vm13, %v590_v58, %v592_v60 }
 0x215   : > { %v596_v0 = vmul.f32 %v3308_v25, %v594_v61  ;;  %v2942_v9 = vpack.c.bf16 %v593_v63, %v587_v5 }
 0x216   : > { %v598_v6 = vpop.permute.xlu1 %597 }
 0x217   : > { %v600_v7 = vpop.permute.xlu0 %599  ;;  %v2940_v8 = vpack.c.bf16 %v596_v0, %v588_v62 }
 0x218   : > { %v602_v11 = vsel %vm374_vm0, %v600_v7, %v598_v6  ;;  %v601_v12 = vsel %vm374_vm0, %v598_v6, %v600_v7 }
 0x219   : > { %v604_v13 = vmul.f32 %v602_v11, %v3366_v54  ;;  %2941 = vmatprep.subr.bf16.mxu1 %v2940_v8  ;;  %v603_v18 = vmul.f32 %v3296_v20, %v601_v12 }
 0x21a   : > { %2943 = vmatpush1.bf16.msra.mxu1 %v2942_v9 }
 0x21b   : > { %625 = vmatprep.subr.mxu1 %v604_v13 }
 0x21e   : > { %626 = vmatpush1.msra.mxu1 %v603_v18 }
 0x21f   : > { %2675 = vmatmul.mubr.msk.f32.vlgmr.msra.gmra.mrb[0].mxu1 %vm605_vm2, %v540_v19 }
 0x220   : > { %1197 = vmatprep.mubr.f32.mxu1 %v3167_v1 }
 0x2f2   : > { %v3476_v21 = vpop.f32.mrb[0].mxu1 }
 0x2f3   : > { %742 = vrot.lane.b32.xlu1 %v3476_v21, %s3169_s28  ;;  %v3480_v22 = vpop.f32.mrb[1].mxu1 }
 0x2f4   : > { %744 = vrot.lane.b32.xlu0 %v3480_v22, %s3169_s28 }
 0x2f7   : > { %718 = vrot.lane.b32.xlu1 %v3476_v21, %s3168_s27 }
 0x2f8   : > { %720 = vrot.lane.b32.xlu0 %v3480_v22, %s3168_s27 }
 0x2fb   : > { %726 = vrot.lane.b32.xlu1 %v3476_v21, %s3170_s29 }
 0x2fc   : > { %728 = vrot.lane.b32.xlu0 %v3480_v22, %s3170_s29 }
 0x2ff   : > { %750 = vrot.lane.b32.xlu1 %v3476_v21, %s3171_s30 }
 0x300   : > { %752 = vrot.lane.b32.xlu0 %v3480_v22, %s3171_s30 }
 0x303   : > { %710 = vrot.lane.b32.xlu1 %v3476_v21, %s3172_s7 }
 0x304   : > { %712 = vrot.lane.b32.xlu0 %v3480_v22, %s3172_s7 }
 0x307   : > { %734 = vrot.lane.b32.xlu1 %v3476_v21, %s3173_s8 }
 0x308   : > { %736 = vrot.lane.b32.xlu0 %v3480_v22, %s3173_s8 }
 0x30b   : > { %758 = vrot.lane.b32.xlu1 %v3476_v21, %s3174_s9 }
 0x30c   : > { %760 = vrot.lane.b32.xlu0 %v3480_v22, %s3174_s9 }
 0x30f   : > { %766 = vrot.lane.b32.xlu1 %v3476_v21, %s3175_s10 }
 0x310   : > { %768 = vrot.lane.b32.xlu0 %v3480_v22, %s3175_s10 }
 0x365   : > { %v743_v29 = vpop.permute.xlu1 %742 }
 0x366   : > { %v745_v30 = vpop.permute.xlu0 %744 }
 0x367   : > { %v746_v40 = vsel %vm347_vm7, %v743_v29, %v745_v30  ;;  %v747_v3 = vsel %vm347_vm7, %v745_v30, %v743_v29 }
 0x368   : > { %v748_v44 = vmul.f32 %v3296_v20, %v746_v40  ;;  %v749_v45 = vmul.f32 %v3312_v26, %v747_v3 }
 0x369   : > { %v719_v31 = vpop.permute.xlu1 %718 }
 0x36a   : > { %v721_v33 = vpop.permute.xlu0 %720  ;;  %v794_v60 = vrot.slane %v748_v44, 6  ;;  %v795_v5 = vrot.slane %v749_v45, 6  ;;  %v936_v44 = vld [vmem:[%s4112_s5 + $0x88] sm:$0xff] }
 0x36b   : > { %v723_v42 = vsel %vm320_vm6, %v721_v33, %v719_v31  ;;  %v722_v46 = vsel %vm320_vm6, %v719_v31, %v721_v33  ;;  %vm696_vm6 = vcmask 1040384  }
 0x36c   : > { %v724_v49 = vmul.f32 %v3302_v23, %v723_v42  ;;  %v816_v18 = vsel %vm415_vm11, %v3476_v21, %v794_v60  ;;  %v817_v31 = vsel %vm415_vm11, %v3480_v22, %v795_v5  ;;  %v923_v60 = vld [vmem:[%s4112_s5 + $0x20] sm:$0xff] }
 0x36d   : > { %v727_v34 = vpop.permute.xlu1 %726 }
 0x36e   : > { %v729_v36 = vpop.permute.xlu0 %728  ;;  %v776_v9 = vrot.slane %v724_v49, 6  ;;  %v937_v49 = vld [vmem:[%s4112_s5 + $0x90] sm:$0xff] }
 0x36f   : > { %v730_v50 = vsel %vm329_vm9, %v727_v34, %v729_v36  ;;  %v731_v55 = vsel %vm329_vm9, %v729_v36, %v727_v34  ;;  %vm2451_vm9 = vcmp.lt.s32.totalorder %v3288_v17, 15 }
 0x370   : > { %v733_v61 = vmul.f32 %v3312_v26, %v730_v50  ;;  %v732_v6 = vmul.f32 %v731_v55, %v3316_v27  ;;  %v938_v50 = vld [vmem:[%s4112_s5 + $0x98] sm:$0xff] }
 0x371   : > { %v751_v37 = vpop.permute.xlu1 %750  ;;  %v3598_v55 = vpack.c.bf16 %v938_v50, %v937_v49 }
 0x372   : > { %v753_v38 = vpop.permute.xlu0 %752  ;;  %v783_v27 = vrot.slane %v733_v61, 4  ;;  %v782_v33 = vrot.slane %v732_v6, 4  ;;  %v924_v61 = vld [vmem:[%s4112_s5 + $0x28] sm:$0xff]  ;;  %v926_v6 = vld [vmem:[%s4112_s5 + $0x38] sm:$0xff] }
 0x373   : > { %v754_v43 = vsel %vm356_vm8, %v751_v37, %v753_v38  ;;  %v755_v4 = vsel %vm356_vm8, %v753_v38, %v751_v37  ;;  %vm2450_vm8 = vcmp.lt.s32.totalorder %v3281_v14, 15 }
 0x374   : > { %v756_v51 = vmul.f32 %v3320_v28, %v754_v43  ;;  %v757_v56 = vmul.f32 %v755_v4, %v3335_v35  ;;  %v777_v35 = vrot.slane %v722_v46, 6  ;;  %v935_v4 = vld [vmem:[%s4112_s5 + $0x80] sm:$0xff] }
 0x375   : > { %v711_v39 = vpop.permute.xlu1 %710 }
 0x376   : > { %v713_v41 = vpop.permute.xlu0 %712  ;;  %v800_v7 = vrot.slane %v756_v51, 4  ;;  %v801_v11 = vrot.slane %v757_v56, 4  ;;  %v921_v56 = vld [vmem:[%s4112_s5 + $0x10] sm:$0xff] }
 0x377   : > { %v714_v47 = vsel %vm311_vm10, %v711_v39, %v713_v41  ;;  %v715_v52 = vsel %vm311_vm10, %v713_v41, %v711_v39  ;;  %vm2457_vm10 = vcmp.lt.s32.totalorder %v3286_v16, 15 }
 0x378   : > { %v717_v58 = vmul.f32 %v3305_v24, %v714_v47  ;;  %v716_v62 = vmul.f32 %v715_v52, %v3328_v32  ;;  %v818_v34 = vsel %vm418_vm14, %v816_v18, %v800_v7  ;;  %v819_v39 = vsel %vm418_vm14, %v817_v31, %v801_v11  ;;  %v919_v47 = vld [vmem:[%s4112_s5] sm:$0xff]  ;;  %v929_v18 = vld [vmem:[%s4112_s5 + $0x50] sm:$0xff] }
 0x379   : > { %v735_v48 = vpop.permute.xlu1 %734  ;;  %v709_v52 = vld [vmem:[%s4111_s4] sm:$0x3] }
 0x37a   : > { %v737_v53 = vpop.permute.xlu0 %736  ;;  %v811_v26 = vsel %vm415_vm11, %v717_v58, %v777_v35  ;;  %v810_v19 = vsel %vm415_vm11, %v716_v62, %v776_v9  ;;  %v941_v62 = vld [vmem:[%s4112_s5 + $0xb0] sm:$0xff]  ;;  %v943_v7 = vld [vmem:[%s4112_s5 + $0xc0] sm:$0xff] }
 0x37b   : > { %v738_v57 = vsel %vm338_vm12, %v735_v48, %v737_v53  ;;  %v739_v23 = vsel %vm338_vm12, %v737_v53, %v735_v48  ;;  %v812_v21 = vsel %vm418_vm14, %v810_v19, %v782_v33  ;;  %v920_v48 = vld [vmem:[%s4112_s5 + $0x8] sm:$0xff]  ;;  %v925_v35 = vld [vmem:[%s4112_s5 + $0x30] sm:$0xff]  ;;  %v947_v19 = vld [vmem:[%s4112_s5 + $0xe0] sm:$0xff]  ;;  %vm2575_vm12 = vcmp.eq.s32.totalorder %v3277_v10, 2 }
 0x37c   : > { %v741_v59 = vmul.f32 %v3305_v24, %v738_v57  ;;  %v740_v63 = vmul.f32 %v3320_v28, %v739_v23  ;;  %v3596_v53 = vpack.c.bf16 %v920_v48, %v919_v47  ;;  %v922_v57 = vld [vmem:[%s4112_s5 + $0x18] sm:$0xff]  ;;  %v940_v23 = vld [vmem:[%s4112_s5 + $0xa8] sm:$0xff]  ;;  %v3652_v9 = vpack.c.bf16 %v926_v6, %v925_v35  ;;  %v931_v33 = vld [vmem:[%s4112_s5 + $0x60] sm:$0xff] }
 0x37d   : > { %v759_v0 = vpop.permute.xlu1 %758  ;;  %v3616_v58 = vpack.c.bf16 %v922_v57, %v921_v56  ;;  %v3747_v47 = vsel %vm907_vm3, 1.0, %v3167_v1  ;;  %v3757_v57 = vcvt.s32.f32 %v3224_v2 }
 0x37e   : > { %v761_v8 = vpop.permute.xlu0 %760  ;;  %v789_v32 = vrot.slane %v741_v59, 2  ;;  %v788_v29 = vrot.slane %v740_v63, 2  ;;  %v942_v63 = vld [vmem:[%s4112_s5 + $0xb8] sm:$0xff] }
 0x37f   : > { %v762_v12 = vsel %vm365_vm13, %v759_v0, %v761_v8  ;;  %v763_v24 = vsel %vm365_vm13, %v761_v8, %v759_v0  ;;  %v3634_v0 = vpack.c.bf16 %v924_v61, %v923_v60  ;;  %v3637_v5 = vpack.c.bf16 %v942_v63, %v941_v62  ;;  %v944_v8 = vld [vmem:[%s4112_s5 + $0xc8] sm:$0xff] }
 0x380   : > { %v765_v28 = vmul.f32 %v3308_v25, %v763_v24  ;;  %v806_v13 = vrot.slane %v762_v12, 2  ;;  %v813_v25 = vsel %vm418_vm14, %v811_v26, %v783_v27  ;;  %v814_v41 = vsel %vm421_vm15, %v812_v21, %v788_v29  ;;  %v927_v12 = vld [vmem:[%s4112_s5 + $0x40] sm:$0xff]  ;;  %v928_v24 = vld [vmem:[%s4112_s5 + $0x48] sm:$0xff]  ;;  %v945_v26 = vld [vmem:[%s4112_s5 + $0xd0] sm:$0xff] }
 0x381   : > { %v767_v30 = vpop.permute.xlu1 %766  ;;  %v815_v3 = vsel %vm421_vm15, %v813_v25, %v789_v32  ;;  %v3655_v11 = vpack.c.bf16 %v944_v8, %v943_v7  ;;  %v946_v32 = vld [vmem:[%s4112_s5 + $0xd8] sm:$0xff]  ;;  %v948_v29 = vld [vmem:[%s4112_s5 + $0xe8] sm:$0xff] }
 0x382   : > { %v807_v36 = vrot.slane %v765_v28, 2  ;;  %v769_v37 = vpop.permute.xlu0 %768  ;;  %v820_v38 = vsel %vm421_vm15, %v818_v34, %v806_v13  ;;  %v3670_v28 = vpack.c.bf16 %v928_v24, %v927_v12  ;;  %v3673_v13 = vpack.c.bf16 %v946_v32, %v945_v26  ;;  %v930_v27 = vld [vmem:[%s4112_s5 + $0x58] sm:$0xff]  ;;  %v932_v34 = vld [vmem:[%s4112_s5 + $0x68] sm:$0xff] }
 0x383   : > { %v771_v40 = vsel %vm374_vm0, %v769_v37, %v767_v30  ;;  %v2946_v43 = vpack.c.bf16 %v820_v38, %v814_v41  ;;  %v770_v45 = vsel %vm374_vm0, %v767_v30, %v769_v37  ;;  %v3688_v30 = vpack.c.bf16 %v930_v27, %v929_v18  ;;  %v949_v37 = vld [vmem:[%s4112_s5 + $0xf0] sm:$0xff]  ;;  %v950_v38 = vld [vmem:[%s4112_s5 + $0xf8] sm:$0xff] }
 0x384   : > { %v821_v22 = vsel %vm421_vm15, %v819_v39, %v807_v36  ;;  %v773_v46 = vmul.f32 %v771_v40, %v3366_v54  ;;  %v3590_v54 = vpack.c.bf16 %v936_v44, %v935_v4  ;;  %v772_v51 = vmul.f32 %v3296_v20, %v770_v45  ;;  %v939_v20 = vld [vmem:[%s4112_s5 + $0xa0] sm:$0xff]  ;;  %v933_v39 = vld [vmem:[%s4112_s5 + $0x70] sm:$0xff]  ;;  %v934_v21 = vld [vmem:[%s4112_s5 + $0x78] sm:$0xff] }
 0x385   : > { %v2944_v42 = vpack.c.bf16 %v821_v22, %v815_v3  ;;  %v3619_v59 = vpack.c.bf16 %v940_v23, %v939_v20  ;;  %v3691_v31 = vpack.c.bf16 %v948_v29, %v947_v19  ;;  %v3701_v36 = vpack.c.bf16 %v932_v34, %v931_v33 }
 0x386   : > { %v3710_v25 = vpack.c.bf16 %v950_v38, %v949_v37  ;;  %v3718_v40 = vpack.c.bf16 %v934_v21, %v933_v39  ;;  %v904_v3 = vadd.s32 8, %v3224_v2  ;;  %v3724_v22 = vsub.s32 0, %v3224_v2 }
 0x387   : > { %2945 = vmatprep.subr.bf16.mxu0 %v2944_v42  ;;  %v3727_v41 = vcvt.s32.f32 %v3281_v14  ;;  %v3730_v42 = vcvt.s32.f32 %v3288_v17 }
 0x388   : > { %2947 = vmatpush1.bf16.msra.mxu0 %v2946_v43  ;;  %vm910_vm4 = vcmp.eq.s32.totalorder %v904_v3, %v3286_v16  ;;  %v3760_v60 = vcvt.s32.f32 %v904_v3 }
 0x389   : > { %2677 = vmatprep.subr.msk.mxu0 %vm415_vm11, %v773_v46  ;;  %v3744_v46 = vsub.s32 1, %v3224_v2 }
 0x38c   : > { %2678 = vmatpush1.msk.msra.mxu0 %vm415_vm11, %v772_v51  ;;  %v3754_v51 = vsel %vm910_vm4, 1.0, %v3167_v1 }
 0x38d   : > { %2679 = vmatmul.mubr.msk.f32.vlgmr.msra.gmra.mrb[4].mxu0 %vm444_vm1, %v709_v52  ;;  %2949 = vmatprep.subr.bf16.mxu0 %v3590_v54 }
 0x38e   : > { %2951 = vmatpush3.bf16.msra.mxu0 %v3596_v53 }
 0x38f   : > { %2953 = vmatprep.subr.bf16.mxu0 %v3598_v55 }
 0x392   : > { %2955 = vmatpush3.bf16.msra.mxu0 %v3616_v58 }
 0x393   : > { %2957 = vmatprep.subr.bf16.mxu0 %v3619_v59 }
 0x396   : > { %2959 = vmatpush3.bf16.msra.mxu0 %v3634_v0 }
 0x397   : > { %2961 = vmatprep.subr.bf16.mxu0 %v3637_v5 }
 0x39a   : > { %2963 = vmatpush3.bf16.msra.mxu0 %v3652_v9 }
 0x39b   : > { %2965 = vmatprep.subr.bf16.mxu0 %v3655_v11 }
 0x39e   : > { %2967 = vmatpush3.bf16.msra.mxu0 %v3670_v28 }
 0x39f   : > { %2969 = vmatprep.subr.bf16.mxu0 %v3673_v13 }
 0x3a2   : > { %2971 = vmatpush3.bf16.msra.mxu0 %v3688_v30 }
 0x3a3   : > { %2973 = vmatprep.subr.bf16.mxu0 %v3691_v31 }
 0x3a6   : > { %2975 = vmatpush3.bf16.msra.mxu0 %v3701_v36 }
 0x3a7   : > { %2977 = vmatprep.subr.bf16.mxu0 %v3710_v25 }
 0x3aa   : > { %2979 = vmatpush3.bf16.msra.mxu0 %v3718_v40 }
 0x460   : > { %v3734_v43 = vpop.f32.mrb[4].mxu0 }
 0x461   : > { %v954_v4 = vrot.slane %v3734_v43, %v3724_v22  ;;  %v1066_v44 = vadd.f32 %v3734_v43, %v3727_v41  ;;  %v3741_v45 = vpop.f32.mrb[5].mxu0  ;;  %v966_v8 = vrot.slane %v3734_v43, %v3744_v46 }
 0x462   : > { %v1067_v48 = vadd.f32 %v3741_v45, %v3730_v42  ;;  %v958_v49 = vrot.slane %v3741_v45, %v3724_v22  ;;  %v970_v63 = vrot.slane %v3741_v45, %v3744_v46 }
 0x463   : > { %v1068_v50 = vmax.f32 %v1066_v44, 0.0  ;;  %v959_v23 = vmul.f32 %v3747_v47, %v954_v4  ;;  %v961_v7 = vmul.f32 0.0, %v954_v4  ;;  %v971_v34 = vmul.f32 %v3747_v47, %v966_v8 }
 0x464   : > { %v1069_v52 = vmax.f32 %v1067_v48, 0.0  ;;  %v960_v56 = vmul.f32 0.0, %v958_v49  ;;  %v962_v62 = vmul.f32 %v3754_v51, %v958_v49  ;;  %v972_v26 = vmul.f32 0.0, %v970_v63 }
 0x465   : > { %v1070_v20 = vmin.f32 %v1068_v50, 15.0  ;;  %v974_v39 = vmul.f32 %v3754_v51, %v970_v63  ;;  %v973_v50 = vmul.f32 0.0, %v966_v8 }
 0x466   : > { %v1071_v61 = vmin.f32 %v1069_v52, 15.0  ;;  %1039 = vmatprep.mubr.f32.mxu0 %v960_v56 }
 0x467   : > { %v1099_v35 = vrot.slane %v1070_v20, %v3744_v46  ;;  %1040 = vmatmul.mubr.f32.vlgmr.msra.gmra.mrb[6].mxu0 %v959_v23 }
 0x468   : > { %1044 = vmatprep.mubr.f32.mxu0 %v962_v62  ;;  %v1103_v6 = vrot.slane %v1071_v61, %v3744_v46 }
 0x469   : > { %v1104_v12 = vsub.f32 %v3757_v57, %v1099_v35  ;;  %v1106_v24 = vsub.f32 %v3760_v60, %v1099_v35 }
 0x46a   : > { %v1105_v32 = vsub.f32 %v3757_v57, %v1103_v6  ;;  %v1107_v18 = vsub.f32 %v3760_v60, %v1103_v6 }
 0x46b   : > { %1045 = vmatmul.mubr.f32.gmra.mrb[8].mxu0 %v961_v7  ;;  %v1108_v27 = vand.u32 2147483647, %v1104_v12  ;;  %v1110_v19 = vand.u32 2147483647, %v1106_v24 }
 0x46c   : > { %1049 = vmatprep.mubr.f32.mxu0 %v972_v26  ;;  %v1109_v29 = vand.u32 2147483647, %v1105_v32  ;;  %v1111_v33 = vand.u32 2147483647, %v1107_v18  ;;  %v3801_v32 = vcvt.s32.f32 %v3284_v15  ;;  %v3804_v18 = vcvt.s32.f32 %v3286_v16 }
 0x46d   : > { %v1112_v37 = vsub.f32 1.0, %v1108_v27  ;;  %v1114_v38 = vsub.f32 1.0, %v1110_v19 }
 0x46e   : > { %v1113_v21 = vsub.f32 1.0, %v1109_v29  ;;  %v1115_v3 = vsub.f32 1.0, %v1111_v33  ;;  %v1060_v27 = vadd.f32 %v3734_v43, %v3801_v32  ;;  %v1061_v19 = vadd.f32 %v3741_v45, %v3804_v18 }
 0x46f   : > { %1050 = vmatmul.mubr.f32.gmra.mrb[10].mxu0 %v971_v34  ;;  %v1116_v4 = vmax.f32 %v1112_v37, 0.0  ;;  %v1118_v44 = vmax.f32 %v1114_v38, 0.0 }
 0x470   : > { %1054 = vmatprep.mubr.f32.mxu0 %v974_v39  ;;  %v1117_v48 = vmax.f32 %v1113_v21, 0.0  ;;  %v1119_v49 = vmax.f32 %v1115_v3, 0.0  ;;  %v1062_v29 = vmax.f32 %v1060_v27, 0.0  ;;  %v1063_v33 = vmax.f32 %v1061_v19, 0.0 }
 0x471   : > { %v2982_v56 = vpack.c.bf16 %v1118_v44, %v1116_v4 }
 0x472   : > { %v2980_v52 = vpack.c.bf16 %v1119_v49, %v1117_v48  ;;  %v1064_v34 = vmin.f32 %v1062_v29, 15.0  ;;  %v1065_v37 = vmin.f32 %v1063_v33, 15.0 }
 0x473   : > { %1055 = vmatmul.mubr.f32.gmra.mrb[12].mxu0 %v973_v50 }
 0x474   : > { %2981 = vmatprep.subr.bf16.mxu1 %v2980_v52  ;;  %1507 = vmatprep.mubr.f32.mxu0 %v3167_v1  ;;  %v1075_v38 = vrot.slane %v1064_v34, %v3724_v22  ;;  %v1079_v39 = vrot.slane %v1065_v37, %v3724_v22 }
 0x475   : > { %2983 = vmatpush1.bf16.msra.mxu1 %v2982_v56 }
 0x476   : > { %2985 = vmatprep.subr.bf16.mxu1 %v3590_v54  ;;  %v1080_v15 = vsub.f32 %v3757_v57, %v1075_v38  ;;  %v1081_v21 = vsub.f32 %v3757_v57, %v1079_v39  ;;  %v1082_v4 = vsub.f32 %v3760_v60, %v1075_v38  ;;  %v1083_v48 = vsub.f32 %v3760_v60, %v1079_v39 }
 0x478   : > { %v1084_v3 = vand.u32 2147483647, %v1080_v15  ;;  %v1085_v44 = vand.u32 2147483647, %v1081_v21  ;;  %v1086_v50 = vand.u32 2147483647, %v1082_v4 }
 0x479   : > { %v1087_v56 = vand.u32 2147483647, %v1083_v48 }
 0x47a   : > { %v1088_v49 = vsub.f32 1.0, %v1084_v3  ;;  %v1089_v52 = vsub.f32 1.0, %v1085_v44 }
 0x53a   : > { %v2742_v20 = vpop.f32.mrb[6].mxu0 }
 0x53b   : > { %v2743_v23 = vpop.f32.mrb[7].mxu0 }
 0x53c   : > { %v2744_v61 = vadd.f32 %v2743_v23, %v2742_v20  ;;  %v1092_v20 = vmax.f32 %v1088_v49, 0.0  ;;  %v1090_v23 = vsub.f32 1.0, %v1086_v50 }
 0x53e   : > { %v2745_v62 = vpop.f32.mrb[8].mxu0  ;;  %2682 = vmatmul.mubr.msk.f32.vlgmr.msra.gmra.mrb[2].mxu1 %vm1120_vm5, %v2744_v61 }
 0x53f   : > { %v2746_v63 = vpop.f32.mrb[9].mxu0  ;;  %1203 = vmatprep.mubr.f32.mxu1 %v3167_v1  ;;  %2987 = vmatpush3.bf16.msra.mxu1 %v3596_v53 }
 0x540   : > { %v2747_v35 = vadd.f32 %v2746_v63, %v2745_v62  ;;  %2989 = vmatprep.subr.bf16.mxu1 %v3598_v55  ;;  %v1093_v62 = vmax.f32 %v1089_v52, 0.0  ;;  %v1091_v63 = vsub.f32 1.0, %v1087_v56 }
 0x542   : > { %v2748_v6 = vpop.f32.mrb[10].mxu0  ;;  %2683 = vmatmul.mubr.msk.f32.gmra.mrb[4].mxu1 %vm1120_vm5, %v2747_v35 }
 0x543   : > { %v2749_v7 = vpop.f32.mrb[11].mxu0  ;;  %1209 = vmatprep.mubr.f32.mxu1 %v3167_v1  ;;  %2991 = vmatpush3.bf16.msra.mxu1 %v3616_v58 }
 0x544   : > { %v2750_v8 = vadd.f32 %v2749_v7, %v2748_v6  ;;  %2993 = vmatprep.subr.bf16.mxu1 %v3619_v59 }
 0x546   : > { %v2751_v12 = vpop.f32.mrb[12].mxu0  ;;  %2684 = vmatmul.mubr.msk.f32.gmra.mrb[6].mxu1 %vm1120_vm5, %v2750_v8  ;;  %v1094_v8 = vmax.f32 %v1090_v23, 0.0 }
 0x547   : > { %v2752_v24 = vpop.f32.mrb[13].mxu0  ;;  %1215 = vmatprep.mubr.f32.mxu1 %v3167_v1  ;;  %2995 = vmatpush3.bf16.msra.mxu1 %v3634_v0 }
 0x548   : > { %v2753_v26 = vadd.f32 %v2752_v24, %v2751_v12  ;;  %2997 = vmatprep.subr.bf16.mxu1 %v3637_v5  ;;  %v1095_v24 = vmax.f32 %v1091_v63, 0.0 }
 0x54a   : > { %2685 = vmatmul.mubr.msk.f32.gmra.mrb[8].mxu1 %vm1120_vm5, %v2753_v26 }
 0x54b   : > { %2999 = vmatpush3.bf16.msra.mxu1 %v3652_v9 }
 0x54c   : > { %3001 = vmatprep.subr.bf16.mxu1 %v3655_v11 }
 0x54f   : > { %3003 = vmatpush3.bf16.msra.mxu1 %v3670_v28 }
 0x550   : > { %3005 = vmatprep.subr.bf16.mxu1 %v3673_v13 }
 0x553   : > { %3007 = vmatpush3.bf16.msra.mxu1 %v3688_v30 }
 0x554   : > { %3009 = vmatprep.subr.bf16.mxu1 %v3691_v31 }
 0x557   : > { %3011 = vmatpush3.bf16.msra.mxu1 %v3701_v36 }
 0x558   : > { %3013 = vmatprep.subr.bf16.mxu1 %v3710_v25 }
 0x55b   : > { %3015 = vmatpush3.bf16.msra.mxu1 %v3718_v40 }
 0x55c   : > { %3021 = vmatprep.subr.bf16.mxu1 %v3590_v54 }
 0x611   : > { %v1199_v61 = vpop.f32.mrb[2].mxu1 }
 0x612   : > { %v1222_v35 = vmul.f32 %v1199_v61, %v1092_v20  ;;  %v1201_v6 = vpop.f32.mrb[3].mxu1 }
 0x613   : > { %v1223_v7 = vmul.f32 %v1201_v6, %v1093_v62 }
 0x615   : > { %v1205_v12 = vpop.f32.mrb[4].mxu1 }
 0x616   : > { %v1224_v26 = vmul.f32 %v1205_v12, %v1094_v8  ;;  %v1207_v27 = vpop.f32.mrb[5].mxu1 }
 0x617   : > { %v1225_v19 = vmul.f32 %v1207_v27, %v1095_v24 }
 0x618   : > { %v1226_v29 = vadd.f32 %v1224_v26, %v1222_v35 }
 0x619   : > { %v1233_v33 = vadd.f32 %v1225_v19, %v1223_v7  ;;  %v1211_v34 = vpop.f32.mrb[6].mxu1 }
 0x61a   : > { %v1227_v37 = vrot.slane %v1226_v29, 4  ;;  %v1240_v38 = vmul.f32 %v1211_v34, %v1092_v20  ;;  %v1213_v39 = vpop.f32.mrb[7].mxu1 }
 0x61b   : > { %v1234_v15 = vrot.slane %v1233_v33, 4  ;;  %v1241_v21 = vmul.f32 %v1213_v39, %v1093_v62 }
 0x61c   : > { %v1228_v3 = vadd.f32 %v1227_v37, %v1226_v29 }
 0x61d   : > { %v1235_v4 = vadd.f32 %v1234_v15, %v1233_v33  ;;  %v1217_v44 = vpop.f32.mrb[8].mxu1 }
 0x61e   : > { %v1242_v48 = vmul.f32 %v1217_v44, %v1094_v8  ;;  %v1219_v49 = vpop.f32.mrb[9].mxu1  ;;  %v1229_v52 = vrot.slane %v1228_v3, 2 }
 0x61f   : > { %v1243_v50 = vmul.f32 %v1219_v49, %v1095_v24  ;;  %v1236_v23 = vrot.slane %v1235_v4, 2 }
 0x620   : > { %v1244_v56 = vadd.f32 %v1242_v48, %v1240_v38  ;;  %v1230_v35 = vadd.f32 %v1229_v52, %v1228_v3 }
 0x621   : > { %v1251_v61 = vadd.f32 %v1243_v50, %v1241_v21  ;;  %v1237_v12 = vadd.f32 %v1236_v23, %v1235_v4 }
 0x622   : > { %v1245_v63 = vrot.slane %v1244_v56, 4  ;;  %v1231_v19 = vrot.slane %v1230_v35, 1 }
 0x623   : > { %v1252_v6 = vrot.slane %v1251_v61, 4  ;;  %v1238_v29 = vrot.slane %v1237_v12, 1 }
 0x624   : > { %v1246_v7 = vadd.f32 %v1245_v63, %v1244_v56  ;;  %v1232_v24 = vadd.f32 %v1231_v19, %v1230_v35 }
 0x625   : > { %v1253_v26 = vadd.f32 %v1252_v6, %v1251_v61  ;;  %v1239_v38 = vadd.f32 %v1238_v29, %v1237_v12 }
 0x626   : > { %v1247_v20 = vrot.slane %v1246_v7, 2 }
 0x627   : > { %v1254_v27 = vrot.slane %v1253_v26, 2 }
 0x628   : > { %v1248_v62 = vadd.f32 %v1247_v20, %v1246_v7 }
 0x629   : > { %v1255_v33 = vadd.f32 %v1254_v27, %v1253_v26 }
 0x62a   : > { %v1249_v34 = vrot.slane %v1248_v62, 1 }
 0x62b   : > { %v1256_v8 = vrot.slane %v1255_v33, 1 }
 0x62c   : > { %v1250_v37 = vadd.f32 %v1249_v34, %v1248_v62 }
 0x62d   : > { %v1257_v39 = vadd.f32 %v1256_v8, %v1255_v33 }
 0x62e   : > { %v1258_v15 = vsel %vm696_vm6, %v1232_v24, %v1250_v37 }
 0x62f   : > { %v3818_v21 = vadd.f32 %v1258_v15, %v3734_v43  ;;  %v1259_v3 = vsel %vm696_vm6, %v1239_v38, %v1257_v39 }
 0x630   : > { %v3822_v4 = vadd.f32 %v1259_v3, %v3741_v45 }
 0x631   : > { %v1265_v44 = vrot.slane %v3818_v21, %v3724_v22  ;;  %v1377_v48 = vadd.f32 %v3818_v21, %v3727_v41  ;;  %v1277_v7 = vrot.slane %v3818_v21, %v3744_v46 }
 0x632   : > { %v1269_v49 = vrot.slane %v3822_v4, %v3724_v22  ;;  %v1378_v50 = vadd.f32 %v3822_v4, %v3730_v42  ;;  %v1281_v61 = vrot.slane %v3822_v4, %v3744_v46 }
 0x633   : > { %v1270_v43 = vmul.f32 %v3747_v47, %v1265_v44  ;;  %v1379_v23 = vmax.f32 %v1377_v48, 0.0  ;;  %v1272_v35 = vmul.f32 0.0, %v1265_v44  ;;  %v1282_v33 = vmul.f32 %v3747_v47, %v1277_v7 }
 0x634   : > { %v1271_v52 = vmul.f32 0.0, %v1269_v49  ;;  %v1380_v56 = vmax.f32 %v1378_v50, 0.0  ;;  %v1273_v45 = vmul.f32 %v3754_v51, %v1269_v49  ;;  %v1283_v20 = vmul.f32 0.0, %v1281_v61 }
 0x635   : > { %v1381_v6 = vmin.f32 %v1379_v23, 15.0  ;;  %v1285_v37 = vmul.f32 %v3754_v51, %v1281_v61  ;;  %v1284_v48 = vmul.f32 0.0, %v1277_v7 }
 0x636   : > { %1350 = vmatprep.mubr.f32.mxu1 %v1271_v52  ;;  %v1382_v63 = vmin.f32 %v1380_v56, 15.0 }
 0x637   : > { %1351 = vmatmul.mubr.f32.vlgmr.msra.gmra.mrb[10].mxu1 %v1270_v43  ;;  %v1410_v26 = vrot.slane %v1381_v6, %v3744_v46 }
 0x638   : > { %1355 = vmatprep.mubr.f32.mxu1 %v1273_v45  ;;  %3023 = vmatpush3.bf16.msra.mxu1 %v3596_v53  ;;  %v1414_v12 = vrot.slane %v1382_v63, %v3744_v46 }
 0x639   : > { %3025 = vmatprep.subr.bf16.mxu1 %v3598_v55  ;;  %v1415_v62 = vsub.f32 %v3757_v57, %v1410_v26  ;;  %v1417_v29 = vsub.f32 %v3760_v60, %v1410_v26 }
 0x63a   : > { %v1416_v27 = vsub.f32 %v3757_v57, %v1414_v12  ;;  %v1418_v19 = vsub.f32 %v3760_v60, %v1414_v12 }
 0x63b   : > { %1356 = vmatmul.mubr.f32.gmra.mrb[12].mxu1 %v1272_v35  ;;  %v1419_v24 = vand.u32 2147483647, %v1415_v62  ;;  %v1421_v38 = vand.u32 2147483647, %v1417_v29  ;;  %v1371_v29 = vadd.f32 %v3818_v21, %v3801_v32 }
 0x63c   : > { %1360 = vmatprep.mubr.f32.mxu1 %v1283_v20  ;;  %v1420_v34 = vand.u32 2147483647, %v1416_v27  ;;  %v1422_v8 = vand.u32 2147483647, %v1418_v19  ;;  %3027 = vmatpush3.bf16.msra.mxu1 %v3616_v58 }
 0x63d   : > { %3029 = vmatprep.subr.bf16.mxu1 %v3619_v59  ;;  %v1423_v3 = vsub.f32 1.0, %v1419_v24  ;;  %v1425_v44 = vsub.f32 1.0, %v1421_v38 }
 0x63e   : > { %v1424_v39 = vsub.f32 1.0, %v1420_v34  ;;  %v1426_v15 = vsub.f32 1.0, %v1422_v8  ;;  %v1373_v34 = vmax.f32 %v1371_v29, 0.0 }
 0x63f   : > { %1361 = vmatmul.mubr.f32.gmra.mrb[14].mxu1 %v1282_v33  ;;  %v1427_v52 = vmax.f32 %v1423_v3, 0.0  ;;  %v1429_v43 = vmax.f32 %v1425_v44, 0.0  ;;  %v1372_v33 = vadd.f32 %v3822_v4, %v3804_v18 }
 0x640   : > { %1365 = vmatprep.mubr.f32.mxu1 %v1285_v37  ;;  %v1428_v49 = vmax.f32 %v1424_v39, 0.0  ;;  %v1430_v50 = vmax.f32 %v1426_v15, 0.0  ;;  %3031 = vmatpush3.bf16.msra.mxu1 %v3634_v0  ;;  %v1375_v24 = vmin.f32 %v1373_v34, 15.0 }
 0x641   : > { %3033 = vmatprep.subr.bf16.mxu1 %v3637_v5  ;;  %v3018_v23 = vpack.c.bf16 %v1429_v43, %v1427_v52  ;;  %v1374_v8 = vmax.f32 %v1372_v33, 0.0 }
 0x642   : > { %v3016_v56 = vpack.c.bf16 %v1430_v50, %v1428_v49  ;;  %v1386_v38 = vrot.slane %v1375_v24, %v3724_v22 }
 0x643   : > { %1366 = vmatmul.mubr.f32.gmra.mrb[16].mxu1 %v1284_v48  ;;  %v1376_v37 = vmin.f32 %v1374_v8, 15.0 }
 0x644   : > { %3017 = vmatprep.subr.bf16.mxu0 %v3016_v56  ;;  %3035 = vmatpush3.bf16.msra.mxu1 %v3652_v9  ;;  %v1391_v15 = vsub.f32 %v3757_v57, %v1386_v38  ;;  %v1393_v3 = vsub.f32 %v3760_v60, %v1386_v38 }
 0x645   : > { %3019 = vmatpush1.bf16.msra.mxu0 %v3018_v23  ;;  %3037 = vmatprep.subr.bf16.mxu1 %v3655_v11  ;;  %v1390_v39 = vrot.slane %v1376_v37, %v3724_v22 }
 0x646   : > { %v1395_v49 = vand.u32 2147483647, %v1391_v15  ;;  %v1397_v50 = vand.u32 2147483647, %v1393_v3 }
 0x647   : > { %v1392_v44 = vsub.f32 %v3757_v57, %v1390_v39  ;;  %v1394_v48 = vsub.f32 %v3760_v60, %v1390_v39 }
 0x648   : > { %3039 = vmatpush3.bf16.msra.mxu1 %v3670_v28  ;;  %v1399_v56 = vsub.f32 1.0, %v1395_v49  ;;  %v1401_v23 = vsub.f32 1.0, %v1397_v50 }
 0x649   : > { %3041 = vmatprep.subr.bf16.mxu1 %v3673_v13  ;;  %v1396_v52 = vand.u32 2147483647, %v1392_v44  ;;  %v1398_v43 = vand.u32 2147483647, %v1394_v48 }
 0x64c   : > { %3043 = vmatpush3.bf16.msra.mxu1 %v3688_v30 }
 0x64d   : > { %3045 = vmatprep.subr.bf16.mxu1 %v3691_v31 }
 0x650   : > { %3047 = vmatpush3.bf16.msra.mxu1 %v3701_v36 }
 0x651   : > { %3049 = vmatprep.subr.bf16.mxu1 %v3710_v25 }
 0x654   : > { %3051 = vmatpush3.bf16.msra.mxu1 %v3718_v40 }
 0x70a   : > { %v2786_v45 = vpop.f32.mrb[10].mxu1 }
 0x70b   : > { %v2787_v61 = vpop.f32.mrb[11].mxu1 }
 0x70c   : > { %v2788_v63 = vadd.f32 %v2787_v61, %v2786_v45  ;;  %v1400_v61 = vsub.f32 1.0, %v1396_v52 }
 0x70e   : > { %v2789_v6 = vpop.f32.mrb[12].mxu1  ;;  %2686 = vmatmul.mubr.msk.f32.vlgmr.msra.gmra.mrb[14].mxu0 %vm1120_vm5, %v2788_v63  ;;  %v1402_v63 = vsub.f32 1.0, %v1398_v43 }
 0x70f   : > { %v2790_v35 = vpop.f32.mrb[13].mxu1  ;;  %1513 = vmatprep.mubr.f32.mxu0 %v3167_v1 }
 0x710   : > { %v2791_v7 = vadd.f32 %v2790_v35, %v2789_v6  ;;  %v1403_v35 = vmax.f32 %v1399_v56, 0.0 }
 0x712   : > { %v2792_v12 = vpop.f32.mrb[14].mxu1  ;;  %2687 = vmatmul.mubr.msk.f32.gmra.mrb[16].mxu0 %vm1120_vm5, %v2791_v7  ;;  %v1405_v7 = vmax.f32 %v1401_v23, 0.0 }
 0x713   : > { %v2793_v26 = vpop.f32.mrb[15].mxu1  ;;  %1519 = vmatprep.mubr.f32.mxu0 %v3167_v1 }
 0x714   : > { %v2794_v20 = vadd.f32 %v2793_v26, %v2792_v12  ;;  %v1404_v12 = vmax.f32 %v1400_v61, 0.0 }
 0x716   : > { %v2795_v27 = vpop.f32.mrb[16].mxu1  ;;  %2688 = vmatmul.mubr.msk.f32.gmra.mrb[18].mxu0 %vm1120_vm5, %v2794_v20  ;;  %v1406_v20 = vmax.f32 %v1402_v63, 0.0 }
 0x717   : > { %v2796_v19 = vpop.f32.mrb[17].mxu1  ;;  %1525 = vmatprep.mubr.f32.mxu0 %v3167_v1 }
 0x718   : > { %v2797_v62 = vadd.f32 %v2796_v19, %v2795_v27 }
 0x71a   : > { %2689 = vmatmul.mubr.msk.f32.gmra.mrb[20].mxu0 %vm1120_vm5, %v2797_v62 }
 0x71b   : > { %1817 = vmatprep.mubr.f32.mxu0 %v3167_v1 }
 0x7e1   : > { %v1509_v45 = vpop.f32.mrb[14].mxu0 }
 0x7e2   : > { %v1511_v6 = vpop.f32.mrb[15].mxu0  ;;  %v1532_v27 = vmul.f32 %v1509_v45, %v1403_v35 }
 0x7e3   : > { %v1533_v29 = vmul.f32 %v1511_v6, %v1404_v12 }
 0x7e5   : > { %v1515_v26 = vpop.f32.mrb[16].mxu0 }
 0x7e6   : > { %v1534_v19 = vmul.f32 %v1515_v26, %v1405_v7  ;;  %v1517_v62 = vpop.f32.mrb[17].mxu0 }
 0x7e7   : > { %v1535_v33 = vmul.f32 %v1517_v62, %v1406_v20 }
 0x7e8   : > { %v1536_v34 = vadd.f32 %v1534_v19, %v1532_v27 }
 0x7e9   : > { %v1543_v8 = vadd.f32 %v1535_v33, %v1533_v29  ;;  %v1521_v24 = vpop.f32.mrb[18].mxu0 }
 0x7ea   : > { %v1537_v37 = vrot.slane %v1536_v34, 4  ;;  %v1523_v38 = vpop.f32.mrb[19].mxu0  ;;  %v1550_v48 = vmul.f32 %v1521_v24, %v1403_v35 }
 0x7eb   : > { %v1544_v39 = vrot.slane %v1543_v8, 4  ;;  %v1551_v52 = vmul.f32 %v1523_v38, %v1404_v12 }
 0x7ec   : > { %v1538_v15 = vadd.f32 %v1537_v37, %v1536_v34 }
 0x7ed   : > { %v1545_v3 = vadd.f32 %v1544_v39, %v1543_v8  ;;  %v1527_v44 = vpop.f32.mrb[20].mxu0 }
 0x7ee   : > { %v1552_v49 = vmul.f32 %v1527_v44, %v1405_v7  ;;  %v1529_v50 = vpop.f32.mrb[21].mxu0  ;;  %v1539_v56 = vrot.slane %v1538_v15, 2 }
 0x7ef   : > { %v1553_v43 = vmul.f32 %v1529_v50, %v1406_v20  ;;  %v1546_v45 = vrot.slane %v1545_v3, 2 }
 0x7f0   : > { %v1554_v23 = vadd.f32 %v1552_v49, %v1550_v48  ;;  %v1540_v26 = vadd.f32 %v1539_v56, %v1538_v15 }
 0x7f1   : > { %v1561_v61 = vadd.f32 %v1553_v43, %v1551_v52  ;;  %v1547_v19 = vadd.f32 %v1546_v45, %v1545_v3 }
 0x7f2   : > { %v1555_v63 = vrot.slane %v1554_v23, 4  ;;  %v1541_v34 = vrot.slane %v1540_v26, 1 }
 0x7f3   : > { %v1562_v6 = vrot.slane %v1561_v61, 4  ;;  %v1548_v37 = vrot.slane %v1547_v19, 1 }
 0x7f4   : > { %v1556_v27 = vadd.f32 %v1555_v63, %v1554_v23  ;;  %v1542_v12 = vadd.f32 %v1541_v34, %v1540_v26 }
 0x7f5   : > { %v1563_v62 = vadd.f32 %v1562_v6, %v1561_v61  ;;  %v1549_v38 = vadd.f32 %v1548_v37, %v1547_v19 }
 0x7f6   : > { %v1557_v29 = vrot.slane %v1556_v27, 2 }
 0x7f7   : > { %v1564_v33 = vrot.slane %v1563_v62, 2 }
 0x7f8   : > { %v1558_v8 = vadd.f32 %v1557_v29, %v1556_v27 }
 0x7f9   : > { %v1565_v35 = vadd.f32 %v1564_v33, %v1563_v62 }
 0x7fa   : > { %v1559_v7 = vrot.slane %v1558_v8, 1 }
 0x7fb   : > { %v1566_v24 = vrot.slane %v1565_v35, 1 }
 0x7fc   : > { %v1560_v20 = vadd.f32 %v1559_v7, %v1558_v8 }
 0x7fd   : > { %v1567_v39 = vadd.f32 %v1566_v24, %v1565_v35 }
 0x7fe   : > { %v1568_v44 = vsel %vm696_vm6, %v1542_v12, %v1560_v20 }
 0x7ff   : > { %v3881_v48 = vadd.f32 %v1568_v44, %v3818_v21  ;;  %v1569_v15 = vsel %vm696_vm6, %v1549_v38, %v1567_v39 }
 0x800   : > { %v3885_v3 = vadd.f32 %v1569_v15, %v3822_v4 }
 0x801   : > { %v1575_v49 = vrot.slane %v3881_v48, %v3724_v22  ;;  %v1687_v50 = vadd.f32 %v3881_v48, %v3727_v41  ;;  %v1587_v27 = vrot.slane %v3881_v48, %v3744_v46 }
 0x802   : > { %v1579_v52 = vrot.slane %v3885_v3, %v3724_v22  ;;  %v1688_v43 = vadd.f32 %v3885_v3, %v3730_v42  ;;  %v1591_v61 = vrot.slane %v3885_v3, %v3744_v46 }
 0x803   : > { %v1580_v21 = vmul.f32 %v3747_v47, %v1575_v49  ;;  %v1689_v45 = vmax.f32 %v1687_v50, 0.0  ;;  %v1582_v26 = vmul.f32 0.0, %v1575_v49  ;;  %v1592_v35 = vmul.f32 %v3747_v47, %v1587_v27 }
 0x804   : > { %v1581_v56 = vmul.f32 0.0, %v1579_v52  ;;  %v1690_v23 = vmax.f32 %v1688_v43, 0.0  ;;  %v1583_v4 = vmul.f32 %v3754_v51, %v1579_v52  ;;  %v1593_v29 = vmul.f32 0.0, %v1591_v61 }
 0x805   : > { %v1691_v6 = vmin.f32 %v1689_v45, 15.0  ;;  %v1595_v20 = vmul.f32 %v3754_v51, %v1591_v61  ;;  %v1594_v50 = vmul.f32 0.0, %v1587_v27 }
 0x806   : > { %1660 = vmatprep.mubr.f32.mxu1 %v1581_v56  ;;  %v1692_v63 = vmin.f32 %v1690_v23, 15.0 }
 0x807   : > { %1661 = vmatmul.mubr.f32.vlgmr.msra.gmra.mrb[18].mxu1 %v1580_v21  ;;  %v1720_v62 = vrot.slane %v1691_v6, %v3744_v46 }
 0x808   : > { %1665 = vmatprep.mubr.f32.mxu1 %v1583_v4  ;;  %v1724_v19 = vrot.slane %v1692_v63, %v3744_v46 }
 0x809   : > { %v1725_v8 = vsub.f32 %v3757_v57, %v1720_v62  ;;  %v1727_v37 = vsub.f32 %v3760_v60, %v1720_v62 }
 0x80a   : > { %v1726_v33 = vsub.f32 %v3757_v57, %v1724_v19  ;;  %v1728_v34 = vsub.f32 %v3760_v60, %v1724_v19 }
 0x80b   : > { %1666 = vmatmul.mubr.f32.gmra.mrb[20].mxu1 %v1582_v26  ;;  %v1729_v12 = vand.u32 2147483647, %v1725_v8  ;;  %v1731_v38 = vand.u32 2147483647, %v1727_v37  ;;  %v1681_v37 = vadd.f32 %v3881_v48, %v3801_v32 }
 0x80c   : > { %1670 = vmatprep.mubr.f32.mxu1 %v1593_v29  ;;  %v1730_v7 = vand.u32 2147483647, %v1726_v33  ;;  %v1732_v24 = vand.u32 2147483647, %v1728_v34 }
 0x80d   : > { %v1733_v15 = vsub.f32 1.0, %v1729_v12  ;;  %v1735_v49 = vsub.f32 1.0, %v1731_v38 }
 0x80e   : > { %v1734_v39 = vsub.f32 1.0, %v1730_v7  ;;  %v1736_v44 = vsub.f32 1.0, %v1732_v24  ;;  %v1683_v7 = vmax.f32 %v1681_v37, 0.0 }
 0x80f   : > { %1671 = vmatmul.mubr.f32.gmra.mrb[22].mxu1 %v1592_v35  ;;  %v1737_v56 = vmax.f32 %v1733_v15, 0.0  ;;  %v1739_v21 = vmax.f32 %v1735_v49, 0.0  ;;  %v1682_v35 = vadd.f32 %v3885_v3, %v3804_v18 }
 0x810   : > { %1675 = vmatprep.mubr.f32.mxu1 %v1595_v20  ;;  %v1738_v52 = vmax.f32 %v1734_v39, 0.0  ;;  %v1740_v43 = vmax.f32 %v1736_v44, 0.0  ;;  %v1685_v12 = vmin.f32 %v1683_v7, 15.0 }
 0x811   : > { %v3054_v45 = vpack.c.bf16 %v1739_v21, %v1737_v56  ;;  %v1684_v24 = vmax.f32 %v1682_v35, 0.0 }
 0x812   : > { %v3052_v23 = vpack.c.bf16 %v1740_v43, %v1738_v52  ;;  %v1696_v38 = vrot.slane %v1685_v12, %v3724_v22 }
 0x813   : > { %1676 = vmatmul.mubr.f32.gmra.mrb[24].mxu1 %v1594_v50  ;;  %v1686_v20 = vmin.f32 %v1684_v24, 15.0 }
 0x814   : > { %2127 = vmatprep.mubr.f32.mxu1 %v3167_v1  ;;  %3053 = vmatprep.subr.bf16.mxu0 %v3052_v23  ;;  %v1701_v44 = vsub.f32 %v3757_v57, %v1696_v38  ;;  %v1703_v15 = vsub.f32 %v3760_v60, %v1696_v38 }
 0x815   : > { %3055 = vmatpush1.bf16.msra.mxu0 %v3054_v45  ;;  %v1700_v39 = vrot.slane %v1686_v20, %v3724_v22 }
 0x816   : > { %3057 = vmatprep.subr.bf16.mxu0 %v3590_v54  ;;  %v1705_v52 = vand.u32 2147483647, %v1701_v44  ;;  %v1707_v43 = vand.u32 2147483647, %v1703_v15 }
 0x817   : > { %v1702_v49 = vsub.f32 %v3757_v57, %v1700_v39  ;;  %v1704_v50 = vsub.f32 %v3760_v60, %v1700_v39 }
 0x818   : > { %v1709_v23 = vsub.f32 1.0, %v1705_v52  ;;  %v1711_v45 = vsub.f32 1.0, %v1707_v43 }
 0x819   : > { %v1706_v56 = vand.u32 2147483647, %v1702_v49  ;;  %v1708_v21 = vand.u32 2147483647, %v1704_v50 }
 0x8da   : > { %v2830_v4 = vpop.f32.mrb[18].mxu1 }
 0x8db   : > { %v2831_v61 = vpop.f32.mrb[19].mxu1 }
 0x8dc   : > { %v2832_v63 = vadd.f32 %v2831_v61, %v2830_v4  ;;  %v1710_v61 = vsub.f32 1.0, %v1706_v56 }
 0x8de   : > { %v2833_v6 = vpop.f32.mrb[20].mxu1  ;;  %2690 = vmatmul.mubr.msk.f32.vlgmr.msra.gmra.mrb[22].mxu0 %vm1120_vm5, %v2832_v63  ;;  %v1712_v63 = vsub.f32 1.0, %v1708_v21 }
 0x8df   : > { %v2834_v26 = vpop.f32.mrb[21].mxu1  ;;  %1823 = vmatprep.mubr.f32.mxu0 %v3167_v1  ;;  %3059 = vmatpush3.bf16.msra.mxu0 %v3596_v53 }
 0x8e0   : > { %v2835_v27 = vadd.f32 %v2834_v26, %v2833_v6  ;;  %3061 = vmatprep.subr.bf16.mxu0 %v3598_v55  ;;  %v1713_v26 = vmax.f32 %v1709_v23, 0.0 }
 0x8e2   : > { %v2836_v19 = vpop.f32.mrb[22].mxu1  ;;  %2691 = vmatmul.mubr.msk.f32.gmra.mrb[24].mxu0 %vm1120_vm5, %v2835_v27  ;;  %v1715_v27 = vmax.f32 %v1711_v45, 0.0 }
 0x8e3   : > { %v2837_v62 = vpop.f32.mrb[23].mxu1  ;;  %1829 = vmatprep.mubr.f32.mxu0 %v3167_v1  ;;  %3063 = vmatpush3.bf16.msra.mxu0 %v3616_v58 }
 0x8e4   : > { %v2838_v29 = vadd.f32 %v2837_v62, %v2836_v19  ;;  %3065 = vmatprep.subr.bf16.mxu0 %v3619_v59  ;;  %v1714_v19 = vmax.f32 %v1710_v61, 0.0 }
 0x8e6   : > { %v2839_v33 = vpop.f32.mrb[24].mxu1  ;;  %2692 = vmatmul.mubr.msk.f32.gmra.mrb[26].mxu0 %vm1120_vm5, %v2838_v29  ;;  %v1716_v29 = vmax.f32 %v1712_v63, 0.0 }
 0x8e7   : > { %v2840_v34 = vpop.f32.mrb[25].mxu1  ;;  %1835 = vmatprep.mubr.f32.mxu0 %v3167_v1  ;;  %3067 = vmatpush3.bf16.msra.mxu0 %v3634_v0 }
 0x8e8   : > { %v2841_v8 = vadd.f32 %v2840_v34, %v2839_v33  ;;  %3069 = vmatprep.subr.bf16.mxu0 %v3637_v5 }
 0x8ea   : > { %2693 = vmatmul.mubr.msk.f32.gmra.mrb[28].mxu0 %vm1120_vm5, %v2841_v8 }
 0x8eb   : > { %3071 = vmatpush3.bf16.msra.mxu0 %v3652_v9 }
 0x8ec   : > { %3073 = vmatprep.subr.bf16.mxu0 %v3655_v11 }
 0x8ef   : > { %3075 = vmatpush3.bf16.msra.mxu0 %v3670_v28 }
 0x8f0   : > { %3077 = vmatprep.subr.bf16.mxu0 %v3673_v13 }
 0x8f3   : > { %3079 = vmatpush3.bf16.msra.mxu0 %v3688_v30 }
 0x8f4   : > { %3081 = vmatprep.subr.bf16.mxu0 %v3691_v31 }
 0x8f7   : > { %3083 = vmatpush3.bf16.msra.mxu0 %v3701_v36 }
 0x8f8   : > { %3085 = vmatprep.subr.bf16.mxu0 %v3710_v25 }
 0x8fb   : > { %3087 = vmatpush3.bf16.msra.mxu0 %v3718_v40 }
 0x9b1   : > { %v1819_v4 = vpop.f32.mrb[22].mxu0 }
 0x9b2   : > { %v1821_v6 = vpop.f32.mrb[23].mxu0  ;;  %v1842_v33 = vmul.f32 %v1819_v4, %v1713_v26 }
 0x9b3   : > { %v1843_v37 = vmul.f32 %v1821_v6, %v1714_v19 }
 0x9b5   : > { %v1825_v62 = vpop.f32.mrb[24].mxu0 }
 0x9b6   : > { %v1844_v34 = vmul.f32 %v1825_v62, %v1715_v27  ;;  %v1827_v8 = vpop.f32.mrb[25].mxu0 }
 0x9b7   : > { %v1845_v35 = vmul.f32 %v1827_v8, %v1716_v29 }
 0x9b8   : > { %v1846_v7 = vadd.f32 %v1844_v34, %v1842_v33 }
 0x9b9   : > { %v1853_v24 = vadd.f32 %v1845_v35, %v1843_v37  ;;  %v1831_v12 = vpop.f32.mrb[26].mxu0 }
 0x9ba   : > { %v1847_v20 = vrot.slane %v1846_v7, 4  ;;  %v1833_v38 = vpop.f32.mrb[27].mxu0  ;;  %v1860_v50 = vmul.f32 %v1831_v12, %v1713_v26 }
 0x9bb   : > { %v1854_v39 = vrot.slane %v1853_v24, 4  ;;  %v1861_v56 = vmul.f32 %v1833_v38, %v1714_v19 }
 0x9bc   : > { %v1848_v44 = vadd.f32 %v1847_v20, %v1846_v7 }
 0x9bd   : > { %v1855_v15 = vadd.f32 %v1854_v39, %v1853_v24  ;;  %v1837_v49 = vpop.f32.mrb[28].mxu0 }
 0x9be   : > { %v1862_v52 = vmul.f32 %v1837_v49, %v1715_v27  ;;  %v1839_v43 = vpop.f32.mrb[29].mxu0  ;;  %v1849_v23 = vrot.slane %v1848_v44, 2 }
 0x9bf   : > { %v1863_v21 = vmul.f32 %v1839_v43, %v1716_v29  ;;  %v1856_v4 = vrot.slane %v1855_v15, 2 }
 0x9c0   : > { %v1864_v45 = vadd.f32 %v1862_v52, %v1860_v50  ;;  %v1850_v62 = vadd.f32 %v1849_v23, %v1848_v44 }
 0x9c1   : > { %v1871_v61 = vadd.f32 %v1863_v21, %v1861_v56  ;;  %v1857_v34 = vadd.f32 %v1856_v4, %v1855_v15 }
 0x9c2   : > { %v1865_v63 = vrot.slane %v1864_v45, 4  ;;  %v1851_v7 = vrot.slane %v1850_v62, 1 }
 0x9c3   : > { %v1872_v6 = vrot.slane %v1871_v61, 4  ;;  %v1858_v20 = vrot.slane %v1857_v34, 1 }
 0x9c4   : > { %v1866_v33 = vadd.f32 %v1865_v63, %v1864_v45  ;;  %v1852_v19 = vadd.f32 %v1851_v7, %v1850_v62 }
 0x9c5   : > { %v1873_v8 = vadd.f32 %v1872_v6, %v1871_v61  ;;  %v1859_v38 = vadd.f32 %v1858_v20, %v1857_v34 }
 0x9c6   : > { %v1867_v37 = vrot.slane %v1866_v33, 2 }
 0x9c7   : > { %v1874_v35 = vrot.slane %v1873_v8, 2 }
 0x9c8   : > { %v1868_v24 = vadd.f32 %v1867_v37, %v1866_v33 }
 0x9c9   : > { %v1875_v26 = vadd.f32 %v1874_v35, %v1873_v8 }
 0x9ca   : > { %v1869_v27 = vrot.slane %v1868_v24, 1 }
 0x9cb   : > { %v1876_v12 = vrot.slane %v1875_v26, 1 }
 0x9cc   : > { %v1870_v29 = vadd.f32 %v1869_v27, %v1868_v24 }
 0x9cd   : > { %v1877_v39 = vadd.f32 %v1876_v12, %v1875_v26 }
 0x9ce   : > { %v1878_v49 = vsel %vm696_vm6, %v1852_v19, %v1870_v29 }
 0x9cf   : > { %v3945_v50 = vadd.f32 %v1878_v49, %v3881_v48  ;;  %v1879_v44 = vsel %vm696_vm6, %v1859_v38, %v1877_v39 }
 0x9d0   : > { %v3949_v15 = vadd.f32 %v1879_v44, %v3885_v3 }
 0x9d1   : > { %v1885_v52 = vrot.slane %v3945_v50, %v3724_v22  ;;  %v1997_v43 = vadd.f32 %v3945_v50, %v3727_v41  ;;  %v1897_v33 = vrot.slane %v3945_v50, %v3744_v46 }
 0x9d2   : > { %v1889_v56 = vrot.slane %v3949_v15, %v3724_v22  ;;  %v1998_v21 = vadd.f32 %v3949_v15, %v3730_v42  ;;  %v1901_v61 = vrot.slane %v3949_v15, %v3744_v46 }
 0x9d3   : > { %v1890_v48 = vmul.f32 %v3747_v47, %v1885_v52  ;;  %v1999_v4 = vmax.f32 %v1997_v43, 0.0  ;;  %v1892_v62 = vmul.f32 0.0, %v1885_v52  ;;  %v1902_v26 = vmul.f32 %v3747_v47, %v1897_v33 }
 0x9d4   : > { %v1891_v23 = vmul.f32 0.0, %v1889_v56  ;;  %v2000_v45 = vmax.f32 %v1998_v21, 0.0  ;;  %v1893_v3 = vmul.f32 %v3754_v51, %v1889_v56  ;;  %v1903_v37 = vmul.f32 0.0, %v1901_v61 }
 0x9d5   : > { %v2001_v6 = vmin.f32 %v1999_v4, 15.0  ;;  %v1905_v29 = vmul.f32 %v3754_v51, %v1901_v61  ;;  %v1904_v43 = vmul.f32 0.0, %v1897_v33 }
 0x9d6   : > { %1970 = vmatprep.mubr.f32.mxu0 %v1891_v23  ;;  %v2002_v63 = vmin.f32 %v2000_v45, 15.0 }
 0x9d7   : > { %1971 = vmatmul.mubr.f32.vlgmr.msra.gmra.mrb[30].mxu0 %v1890_v48  ;;  %v2030_v8 = vrot.slane %v2001_v6, %v3744_v46 }
 0x9d8   : > { %1975 = vmatprep.mubr.f32.mxu0 %v1893_v3  ;;  %v2034_v34 = vrot.slane %v2002_v63, %v3744_v46  ;;  %v692_v63 = vsub.s32 2, %v3224_v2 }
 0x9d9   : > { %v2035_v24 = vsub.f32 %v3757_v57, %v2030_v8  ;;  %v2037_v20 = vsub.f32 %v3760_v60, %v2030_v8 }
 0x9da   : > { %v2036_v35 = vsub.f32 %v3757_v57, %v2034_v34  ;;  %v2038_v7 = vsub.f32 %v3760_v60, %v2034_v34  ;;  %v3980_v34 = vld [vmem:[%s3230_s26] sm:$0xf] }
 0x9db   : > { %1976 = vmatmul.mubr.f32.gmra.mrb[32].mxu0 %v1892_v62  ;;  %v2039_v19 = vand.u32 2147483647, %v2035_v24  ;;  %v2041_v38 = vand.u32 2147483647, %v2037_v20  ;;  %v2199_v8 = vrot.slane %v3980_v34, %v692_v63 }
 0x9dc   : > { %1980 = vmatprep.mubr.f32.mxu0 %v1903_v37  ;;  %v2040_v27 = vand.u32 2147483647, %v2036_v35  ;;  %v2042_v12 = vand.u32 2147483647, %v2038_v7 }
 0x9dd   : > { %v2043_v44 = vsub.f32 1.0, %v2039_v19  ;;  %v2045_v52 = vsub.f32 1.0, %v2041_v38  ;;  %v2209_v7 = vrot.slane %v2199_v8, %v3724_v22 }
 0x9de   : > { %v2044_v39 = vsub.f32 1.0, %v2040_v27  ;;  %v2046_v49 = vsub.f32 1.0, %v2042_v12 }
 0x9df   : > { %1981 = vmatmul.mubr.f32.gmra.mrb[34].mxu0 %v1902_v26  ;;  %v2047_v23 = vmax.f32 %v2043_v44, 0.0  ;;  %v2049_v48 = vmax.f32 %v2045_v52, 0.0 }
 0x9e0   : > { %1985 = vmatprep.mubr.f32.mxu0 %v1905_v29  ;;  %v2048_v56 = vmax.f32 %v2044_v39, 0.0  ;;  %v2050_v21 = vmax.f32 %v2046_v49, 0.0 }
 0x9e1   : > { %v3090_v4 = vpack.c.bf16 %v2049_v48, %v2047_v23 }
 0x9e2   : > { %v3088_v45 = vpack.c.bf16 %v2050_v21, %v2048_v56 }
 0x9e3   : > { %1986 = vmatmul.mubr.f32.gmra.mrb[36].mxu0 %v1904_v43 }
 0x9e4   : > { %2419 = vmatprep.mubr.f32.mxu0 %v3167_v1  ;;  %3089 = vmatprep.subr.bf16.mxu1 %v3088_v45 }
 0x9e5   : > { %3091 = vmatpush1.bf16.msra.mxu1 %v3090_v4 }
 0x9e6   : > { %3093 = vmatprep.subr.bf16.mxu1 %v3590_v54 }
 0xaaa   : > { %v2874_v3 = vpop.f32.mrb[30].mxu0 }
 0xaab   : > { %v2875_v61 = vpop.f32.mrb[31].mxu0 }
 0xaac   : > { %v2876_v6 = vadd.f32 %v2875_v61, %v2874_v3 }
 0xaae   : > { %v2877_v62 = vpop.f32.mrb[32].mxu0  ;;  %2694 = vmatmul.mubr.msk.f32.vlgmr.msra.gmra.mrb[26].mxu1 %vm1120_vm5, %v2876_v6 }
 0xaaf   : > { %v2878_v33 = vpop.f32.mrb[33].mxu0  ;;  %2133 = vmatprep.mubr.f32.mxu1 %v3167_v1  ;;  %3095 = vmatpush3.bf16.msra.mxu1 %v3596_v53 }
 0xab0   : > { %v2879_v54 = vadd.f32 %v2878_v33, %v2877_v62  ;;  %3097 = vmatprep.subr.bf16.mxu1 %v3598_v55  ;;  %v2211_v55 = vmul.f32 0.0, %v2209_v7 }
 0xab2   : > { %v2880_v37 = vpop.f32.mrb[34].mxu0  ;;  %2695 = vmatmul.mubr.msk.f32.gmra.mrb[28].mxu1 %vm1120_vm5, %v2879_v54 }
 0xab3   : > { %v2881_v35 = vpop.f32.mrb[35].mxu0  ;;  %2139 = vmatprep.mubr.f32.mxu1 %v3167_v1  ;;  %3099 = vmatpush3.bf16.msra.mxu1 %v3616_v58  ;;  %v2195_v58 = vrot.slane %v3980_v34, %v3724_v22 }
 0xab4   : > { %v2882_v53 = vadd.f32 %v2881_v35, %v2880_v37  ;;  %3101 = vmatprep.subr.bf16.mxu1 %v3619_v59 }
 0xab5   : > { %v2205_v59 = vrot.slane %v2195_v58, %v3724_v22 }
 0xab6   : > { %v2883_v24 = vpop.f32.mrb[36].mxu0  ;;  %2696 = vmatmul.mubr.msk.f32.gmra.mrb[30].mxu1 %vm1120_vm5, %v2882_v53 }
 0xab7   : > { %v2884_v20 = vpop.f32.mrb[37].mxu0  ;;  %2145 = vmatprep.mubr.f32.mxu1 %v3167_v1  ;;  %3103 = vmatpush3.bf16.msra.mxu1 %v3634_v0  ;;  %v2210_v0 = vmul.f32 %v3747_v47, %v2205_v59 }
 0xab8   : > { %v2885_v26 = vadd.f32 %v2884_v20, %v2883_v24  ;;  %3105 = vmatprep.subr.bf16.mxu1 %v3637_v5  ;;  %v2213_v5 = vmul.f32 %v3754_v51, %v2209_v7 }
 0xaba   : > { %2697 = vmatmul.mubr.msk.f32.gmra.mrb[32].mxu1 %vm1120_vm5, %v2885_v26 }
 0xabb   : > { %3107 = vmatpush3.bf16.msra.mxu1 %v3652_v9  ;;  %2278 = vmatprep.mubr.f32.mxu1 %v2211_v55  ;;  %v2212_v9 = vmul.f32 0.0, %v2205_v59 }
 0xabc   : > { %3109 = vmatprep.subr.bf16.mxu1 %v3655_v11  ;;  %v1991_v11 = vadd.f32 %v3945_v50, %v3801_v32 }
 0xabf   : > { %3111 = vmatpush3.bf16.msra.mxu1 %v3670_v28  ;;  %v1992_v28 = vadd.f32 %v3949_v15, %v3804_v18 }
 0xac0   : > { %3113 = vmatprep.subr.bf16.mxu1 %v3673_v13  ;;  %v1993_v13 = vmax.f32 %v1991_v11, 0.0 }
 0xac3   : > { %3115 = vmatpush3.bf16.msra.mxu1 %v3688_v30  ;;  %v1994_v30 = vmax.f32 %v1992_v28, 0.0 }
 0xac4   : > { %3117 = vmatprep.subr.bf16.mxu1 %v3691_v31  ;;  %v1995_v31 = vmin.f32 %v1993_v13, 15.0 }
 0xac7   : > { %3119 = vmatpush3.bf16.msra.mxu1 %v3701_v36  ;;  %v1996_v36 = vmin.f32 %v1994_v30, 15.0 }
 0xac8   : > { %3121 = vmatprep.subr.bf16.mxu1 %v3710_v25  ;;  %v2006_v25 = vrot.slane %v1995_v31, %v3724_v22 }
 0xaca   : > { %v2011_v47 = vsub.f32 %v3757_v57, %v2006_v25  ;;  %v2013_v51 = vsub.f32 %v3760_v60, %v2006_v25 }
 0xacb   : > { %3123 = vmatpush3.bf16.msra.mxu1 %v3718_v40  ;;  %v2010_v40 = vrot.slane %v1996_v36, %v3724_v22 }
 0xacc   : > { %v2015_v19 = vand.u32 2147483647, %v2011_v47  ;;  %v2017_v29 = vand.u32 2147483647, %v2013_v51 }
 0xacd   : > { %v2012_v27 = vsub.f32 %v3757_v57, %v2010_v40  ;;  %v2014_v12 = vsub.f32 %v3760_v60, %v2010_v40 }
 0xace   : > { %2279 = vmatmul.mubr.f32.vlgmr.msra.gmra.mrb[34].mxu1 %v2210_v0  ;;  %v2019_v49 = vsub.f32 1.0, %v2015_v19  ;;  %v2021_v44 = vsub.f32 1.0, %v2017_v29 }
 0xacf   : > { %2283 = vmatprep.mubr.f32.mxu1 %v2213_v5  ;;  %v2016_v38 = vand.u32 2147483647, %v2012_v27  ;;  %v2018_v39 = vand.u32 2147483647, %v2014_v12 }
 0xad0   : > { %v2023_v23 = vmax.f32 %v2019_v49, 0.0  ;;  %v2025_v48 = vmax.f32 %v2021_v44, 0.0 }
 0xad1   : > { %v2020_v43 = vsub.f32 1.0, %v2016_v38  ;;  %v2022_v56 = vsub.f32 1.0, %v2018_v39 }
 0xad2   : > { %2284 = vmatmul.mubr.f32.gmra.mrb[36].mxu1 %v2212_v9 }
 0xad3   : > { %v2024_v45 = vmax.f32 %v2020_v43, 0.0  ;;  %v2026_v3 = vmax.f32 %v2022_v56, 0.0 }
 0xb81   : > { %v2129_v52 = vpop.f32.mrb[26].mxu1 }
 0xb82   : > { %v2131_v21 = vpop.f32.mrb[27].mxu1  ;;  %v2152_v61 = vmul.f32 %v2129_v52, %v2023_v23 }
 0xb83   : > { %v2153_v33 = vmul.f32 %v2131_v21, %v2024_v45 }
 0xb85   : > { %v2135_v4 = vpop.f32.mrb[28].mxu1 }
 0xb86   : > { %v2154_v6 = vmul.f32 %v2135_v4, %v2025_v48  ;;  %v2137_v62 = vpop.f32.mrb[29].mxu1 }
 0xb87   : > { %v2155_v8 = vmul.f32 %v2137_v62, %v2026_v3 }
 0xb88   : > { %v2156_v54 = vadd.f32 %v2154_v6, %v2152_v61 }
 0xb89   : > { %v2163_v37 = vadd.f32 %v2155_v8, %v2153_v33  ;;  %v2141_v35 = vpop.f32.mrb[30].mxu1 }
 0xb8a   : > { %v2157_v7 = vrot.slane %v2156_v54, 4  ;;  %v2143_v53 = vpop.f32.mrb[31].mxu1  ;;  %v2170_v58 = vmul.f32 %v2141_v35, %v2023_v23 }
 0xb8b   : > { %v2164_v24 = vrot.slane %v2163_v37, 4  ;;  %v2171_v5 = vmul.f32 %v2143_v53, %v2024_v45 }
 0xb8c   : > { %v2158_v20 = vadd.f32 %v2157_v7, %v2156_v54 }
 0xb8d   : > { %v2165_v55 = vadd.f32 %v2164_v24, %v2163_v37  ;;  %v2147_v26 = vpop.f32.mrb[32].mxu1 }
 0xb8e   : > { %v2172_v59 = vmul.f32 %v2147_v26, %v2025_v48  ;;  %v2149_v0 = vpop.f32.mrb[33].mxu1  ;;  %v2159_v11 = vrot.slane %v2158_v20, 2 }
 0xb8f   : > { %v2173_v9 = vmul.f32 %v2149_v0, %v2026_v3  ;;  %v2166_v13 = vrot.slane %v2165_v55, 2 }
 0xb90   : > { %v2174_v28 = vadd.f32 %v2172_v59, %v2170_v58  ;;  %v2160_v25 = vadd.f32 %v2159_v11, %v2158_v20 }
 0xb91   : > { %v2181_v30 = vadd.f32 %v2173_v9, %v2171_v5  ;;  %v2167_v47 = vadd.f32 %v2166_v13, %v2165_v55 }
 0xb92   : > { %v2175_v31 = vrot.slane %v2174_v28, 4  ;;  %v2161_v19 = vrot.slane %v2160_v25, 1 }
 0xb93   : > { %v2182_v36 = vrot.slane %v2181_v30, 4  ;;  %v2168_v38 = vrot.slane %v2167_v47, 1 }
 0xb94   : > { %v2176_v40 = vadd.f32 %v2175_v31, %v2174_v28  ;;  %v2162_v52 = vadd.f32 %v2161_v19, %v2160_v25  ;;  %v2676_v25 = vrot.slane %v3980_v34, 9 }
 0xb95   : > { %v2183_v51 = vadd.f32 %v2182_v36, %v2181_v30  ;;  %v2169_v56 = vadd.f32 %v2168_v38, %v2167_v47 }
 0xb96   : > { %v2177_v27 = vrot.slane %v2176_v40, 2  ;;  %v683_v47 = vsub.f32 %v3980_v34, %v2676_v25 }
 0xb97   : > { %v2184_v12 = vrot.slane %v2183_v51, 2 }
 0xb98   : > { %v2178_v29 = vadd.f32 %v2177_v27, %v2176_v40 }
 0xb99   : > { %v2185_v39 = vadd.f32 %v2184_v12, %v2183_v51  ;;  %v684_v51 = vmul.f32 %v683_v47, %v683_v47 }
 0xb9a   : > { %v2179_v49 = vrot.slane %v2178_v29, 1 }
 0xb9b   : > { %v2186_v44 = vrot.slane %v2185_v39, 1  ;;  %v689_v27 = vrot.slane %v684_v51, %v3724_v22  ;;  %v693_v12 = vrot.slane %v684_v51, %v692_v63 }
 0xb9c   : > { %v2180_v43 = vadd.f32 %v2179_v49, %v2178_v29  ;;  %v2700_v49 = vsel %vm2450_vm8, 1.0, %v3167_v1 }
 0xb9d   : > { %v2187_v21 = vadd.f32 %v2186_v44, %v2185_v39  ;;  %v697_v19 = vsel %vm696_vm6, %v689_v27, 0.0  ;;  %v698_v29 = vsel %vm696_vm6, %v693_v12, 0.0  ;;  %v2701_v44 = vsel %vm2451_vm9, 1.0, %v3167_v1 }
 0xb9e   : > { %v2188_v23 = vsel %vm696_vm6, %v2162_v52, %v2180_v43  ;;  %v699_v38 = vadd.f32 %v698_v29, %v697_v19 }
 0xb9f   : > { %v4022_v48 = vadd.f32 %v2188_v23, %v3945_v50  ;;  %v2189_v45 = vsel %vm696_vm6, %v2169_v56, %v2187_v21  ;;  %v2702_v23 = vsel %vm2457_vm10, 1.0, %v3167_v1 }
 0xba0   : > { %v4026_v4 = vadd.f32 %v2189_v45, %v3949_v15 }
 0xba1   : > { %2462 = vrot.lane.b32.xlu1 %v4022_v48, %s3169_s28  ;;  %v2918_v3 = vpop.f32.mrb[34].mxu1  ;;  %v2295_v61 = vadd.f32 %v4022_v48, %v3727_v41 }
 0xba2   : > { %2464 = vrot.lane.b32.xlu0 %v4026_v4, %s3169_s28  ;;  %v2296_v6 = vadd.f32 %v4026_v4, %v3730_v42  ;;  %v2919_v50 = vpop.f32.mrb[35].mxu1 }
 0xba3   : > { %v2920_v62 = vadd.f32 %v2919_v50, %v2918_v3  ;;  %v2297_v33 = vmax.f32 %v2295_v61, 0.0 }
 0xba4   : > { %v2298_v8 = vmax.f32 %v2296_v6, 0.0 }
 0xba5   : > { %2472 = vrot.lane.b32.xlu1 %v4022_v48, %s3174_s9  ;;  %v2299_v15 = vmin.f32 %v2297_v33, 15.0  ;;  %v2921_v54 = vpop.f32.mrb[36].mxu1 }
 0xba6   : > { %2474 = vrot.lane.b32.xlu0 %v4026_v4, %s3174_s9  ;;  %v2300_v37 = vmin.f32 %v2298_v8, 15.0  ;;  %v2922_v41 = vpop.f32.mrb[37].mxu1 }
 0xba7   : > { %v2328_v35 = vrot.slane %v2299_v15, %v3744_v46  ;;  %v2923_v7 = vadd.f32 %v2922_v41, %v2921_v54 }
 0xba8   : > { %v2332_v53 = vrot.slane %v2300_v37, %v3744_v46 }
 0xba9   : > { %v2333_v42 = vsub.f32 %v3757_v57, %v2328_v35  ;;  %v2335_v24 = vsub.f32 %v3760_v60, %v2328_v35 }
 0xbaa   : > { %v2334_v20 = vsub.f32 %v3757_v57, %v2332_v53  ;;  %v2336_v55 = vsub.f32 %v3760_v60, %v2332_v53 }
 0xbab   : > { %v2337_v26 = vand.u32 2147483647, %v2333_v42  ;;  %v2339_v58 = vand.u32 2147483647, %v2335_v24 }
 0xbac   : > { %v2338_v59 = vand.u32 2147483647, %v2334_v20  ;;  %v2340_v0 = vand.u32 2147483647, %v2336_v55 }
 0xbad   : > { %v2341_v5 = vsub.f32 1.0, %v2337_v26  ;;  %v2343_v9 = vsub.f32 1.0, %v2339_v58 }
 0xbae   : > { %v2342_v11 = vsub.f32 1.0, %v2338_v59  ;;  %v2344_v28 = vsub.f32 1.0, %v2340_v0 }
 0xbaf   : > { %v2345_v13 = vmax.f32 %v2341_v5, 0.0  ;;  %v2347_v30 = vmax.f32 %v2343_v9, 0.0 }
 0xbb0   : > { %v2346_v31 = vmax.f32 %v2342_v11, 0.0  ;;  %v2348_v46 = vmax.f32 %v2344_v28, 0.0 }
 0xbb1   : > { %v3126_v40 = vpack.c.bf16 %v2347_v30, %v2345_v13 }
 0xbb2   : > { %v3124_v36 = vpack.c.bf16 %v2348_v46, %v2346_v31  ;;  %v2536_v31 = vmul.f32 %v2702_v23, %v2701_v44 }
 0xbb4   : > { %3125 = vmatprep.subr.bf16.mxu0 %v3124_v36 }
 0xbb5   : > { %3127 = vmatpush1.bf16.msra.mxu0 %v3126_v40 }
 0xbb8   : > { %2698 = vmatmul.mubr.msk.f32.vlgmr.msra.gmra.mrb[38].mxu0 %vm1120_vm5, %v2920_v62 }
 0xbb9   : > { %2425 = vmatprep.mubr.f32.mxu0 %v3167_v1 }
 0xbbc   : > { %2699 = vmatmul.mubr.msk.f32.gmra.mrb[40].mxu0 %vm1120_vm5, %v2923_v7 }
 0xbc9   : > { %700 = vadd.xlane.f32.xlu1 %v699_v38 }
 0xc13   : > { %v2463_v34 = vpop.permute.xlu1 %2462 }
 0xc14   : > { %v2465_v39 = vpop.permute.xlu0 %2464 }
 0xc15   : > { %v2466_v2 = vsel %vm347_vm7, %v2463_v34, %v2465_v39  ;;  %v2467_v63 = vsel %vm347_vm7, %v2465_v39, %v2463_v34  ;;  %vm2555_vm7 = vcmp.eq.s32.totalorder %v3277_v10, 0 }
 0xc16   : > { %v2468_v52 = vsub.f32 %v2466_v2, %v4022_v48  ;;  %v2469_v43 = vsub.f32 %v2467_v63, %v4026_v4 }
 0xc17   : > { %v2473_v14 = vpop.permute.xlu1 %2472 }
 0xc18   : > { %v2470_v17 = vmul.f32 %v2700_v49, %v2468_v52  ;;  %v2471_v56 = vmul.f32 %v2701_v44, %v2469_v43  ;;  %v2475_v21 = vpop.permute.xlu0 %2474  ;;  %v2289_v44 = vadd.f32 %v4022_v48, %v3801_v32 }
 0xc19   : > { %v2476_v45 = vsel %vm365_vm13, %v2473_v14, %v2475_v21  ;;  %v2477_v3 = vsel %vm365_vm13, %v2475_v21, %v2473_v14  ;;  %vm2593_vm13 = vcmask 1042432  }
 0xc1a   : > { %v2515_v61 = vadd.f32 1.0, %v2470_v17  ;;  %v2516_v6 = vadd.f32 1.0, %v2471_v56  ;;  %v2478_v50 = vsub.f32 %v2476_v45, %v4022_v48  ;;  %v2479_v62 = vsub.f32 %v2477_v3, %v4026_v4 }
 0xc1b   : > { %v2482_v33 = vmul.f32 %v2470_v17, %v2470_v17  ;;  %v2483_v16 = vmul.f32 %v2471_v56, %v2471_v56  ;;  %v2291_v52 = vmax.f32 %v2289_v44, 0.0 }
 0xc1c   : > { %v2519_v8 = vrot.slane %v2515_v61, 1  ;;  %v2520_v15 = vrot.slane %v2516_v6, 1  ;;  %v2481_v54 = vmul.f32 %v2702_v23, %v2479_v62  ;;  %v2513_v37 = vadd.f32 1.0, %v2478_v50 }
 0xc1d   : > { %v2527_v41 = vrot.slane %v2478_v50, 1  ;;  %v2484_v35 = vsel %vm415_vm11, %v2482_v33, 0.0  ;;  %v2485_v7 = vsel %vm415_vm11, %v2483_v16, 0.0  ;;  %v2497_v53 = vmul.f32 %v2478_v50, %v2478_v50 }
 0xc1e   : > { %v2514_v42 = vadd.f32 1.0, %v2481_v54  ;;  %v2523_v24 = vmul.f32 %v2519_v8, %v2513_v37  ;;  %v2528_v20 = vrot.slane %v2481_v54, 1  ;;  %v2486_v55 = vadd.f32 %v2485_v7, %v2484_v35 }
 0xc1f   : > { %v2531_v26 = vmul.f32 %v2527_v41, %v2470_v17  ;;  %v2498_v58 = vmul.f32 %v2481_v54, %v2481_v54  ;;  %v2499_v5 = vsel %vm415_vm11, %v2497_v53, 0.0  ;;  %v2293_v14 = vmin.f32 %v2291_v52, 15.0 }
 0xc20   : > { %2487 = vadd.xlane.f32.xlu0 %v2486_v55  ;;  %v2524_v59 = vmul.f32 %v2520_v15, %v2514_v42  ;;  %v2532_v0 = vmul.f32 %v2528_v20, %v2471_v56 }
 0xc21   : > { %v2500_v9 = vsel %vm415_vm11, %v2498_v58, 0.0  ;;  %v2533_v11 = vsub.f32 %v2523_v24, %v2531_v26  ;;  %v2304_v56 = vrot.slane %v2293_v14, %v3724_v22  ;;  %vm2564_vm11 = vcmp.eq.s32.totalorder %v3277_v10, 1 }
 0xc22   : > { %v2501_v28 = vadd.f32 %v2500_v9, %v2499_v5  ;;  %v2534_v13 = vsub.f32 %v2524_v59, %v2532_v0  ;;  %v2703_v14 = vsel %vm2555_vm7, 1.0, %v3167_v1 }
 0xc23   : > { %v2537_v30 = vsub.f32 0.0, %v2533_v11  ;;  %v2309_v23 = vsub.f32 %v3757_v57, %v2304_v56  ;;  %v2311_v45 = vsub.f32 %v3760_v60, %v2304_v56 }
 0xc24   : > { %2502 = vadd.xlane.f32.xlu0 %v2501_v28  ;;  %v2538_v46 = vsub.f32 0.0, %v2534_v13 }
 0xc25   : > { %v2539_v36 = vmax.f32 %v2537_v30, 0.0  ;;  %v2313_v32 = vand.u32 2147483647, %v2309_v23  ;;  %v2315_v6 = vand.u32 2147483647, %v2311_v45 }
 0xc26   : > { %v2540_v25 = vmax.f32 %v2538_v46, 0.0 }
 0xc27   : > { %v2541_v40 = vmul.f32 %v2700_v49, %v2539_v36  ;;  %v2290_v49 = vadd.f32 %v4026_v4, %v3804_v18  ;;  %v2317_v62 = vsub.f32 1.0, %v2313_v32  ;;  %v2319_v33 = vsub.f32 1.0, %v2315_v6 }
 0xc28   : > { %v2542_v47 = vmul.f32 %v2540_v25, %v2536_v31 }
 0xc29   : > { %v2543_v51 = vsel %vm696_vm6, %v2541_v40, 0.0  ;;  %v2292_v43 = vmax.f32 %v2290_v49, 0.0  ;;  %v2321_v37 = vmax.f32 %v2317_v62, 0.0 }
 0xc2a   : > { %v2544_v27 = vsel %vm696_vm6, %v2542_v47, 0.0 }
 0xc2b   : > { %v2545_v12 = vadd.f32 %v2544_v27, %v2543_v51  ;;  %v2294_v17 = vmin.f32 %v2292_v43, 15.0 }
 0xc2d   : > { %2546 = vadd.xlane.f32.xlu1 %v2545_v12  ;;  %v2308_v21 = vrot.slane %v2294_v17, %v3724_v22  ;;  %v2323_v22 = vmax.f32 %v2319_v33, 0.0  ;;  %v2704_v17 = vsel %vm2564_vm11, 1.0, %v3167_v1 }
 0xc2f   : > { %v2310_v3 = vsub.f32 %v3757_v57, %v2308_v21  ;;  %v2312_v61 = vsub.f32 %v3760_v60, %v2308_v21 }
 0xc31   : > { %v2314_v50 = vand.u32 2147483647, %v2310_v3  ;;  %v2316_v18 = vand.u32 2147483647, %v2312_v61  ;;  %v2705_v61 = vsel %vm2575_vm12, 1.0, %v3167_v1 }
 0xc33   : > { %v2318_v8 = vsub.f32 1.0, %v2314_v50  ;;  %v2320_v15 = vsub.f32 1.0, %v2316_v18 }
 0xc35   : > { %v2322_v41 = vmax.f32 %v2318_v8, 0.0  ;;  %v2324_v7 = vmax.f32 %v2320_v15, 0.0 }
 0xc56   : > { %v701_v19 = vpop.xlane.xlu1 %700 }
 0xc57   : > { %v702_v29 = vrot.slane %v701_v19, 4 }
 0xc59   : > { %v703_v38 = vadd.f32 %v702_v29, %v701_v19 }
 0xc5b   : > { %v704_v34 = vrot.slane %v703_v38, 2 }
 0xc5d   : > { %v705_v39 = vadd.f32 %v704_v34, %v703_v38 }
 0xc5f   : > { %v706_v2 = vrot.slane %v705_v39, 1 }
 0xc61   : > { %v707_v63 = vadd.f32 %v706_v2, %v705_v39 }
 0xc63   : > { %3128 = vpush %v707_v63 }
 0xc8b   : > { %v2421_v16 = vpop.f32.mrb[38].mxu0 }
 0xc8c   : > { %v2423_v54 = vpop.f32.mrb[39].mxu0  ;;  %v2432_v53 = vmul.f32 %v2421_v16, %v2321_v37  ;;  %v2587_v37 = vrot.slane %v4022_v48, 7 }
 0xc8d   : > { %v2433_v24 = vmul.f32 %v2423_v54, %v2322_v41 }
 0xc8f   : > { %v2427_v35 = vpop.f32.mrb[40].mxu0 }
 0xc90   : > { %v2434_v42 = vmul.f32 %v2427_v35, %v2323_v22  ;;  %v2429_v57 = vpop.f32.mrb[41].mxu0  ;;  %v2588_v22 = vrot.slane %v4026_v4, 7 }
 0xc91   : > { %v2435_v60 = vmul.f32 %v2429_v57, %v2324_v7 }
 0xc92   : > { %v2436_v20 = vadd.f32 %v2434_v42, %v2432_v53 }
 0xc93   : > { %v2443_v55 = vadd.f32 %v2435_v60, %v2433_v24 }
 0xc94   : > { %v2437_v38 = vrot.slane %v2436_v20, 4  ;;  %s3129_s26 = spop %3128 }
 0xc95   : > { %v2444_v34 = vrot.slane %v2443_v55, 4  ;;  %v2561_v23 = vstv %s3129_s26 }
 0xc96   : > { %v2438_v39 = vadd.f32 %v2437_v38, %v2436_v20  ;;  %v2562_v6 = vmul.f32 %v2703_v14, %v2561_v23  ;;  %v2563_v50 = vmul.f32 0.0, %v2561_v23 }
 0xc97   : > { %v2445_v2 = vadd.f32 %v2444_v34, %v2443_v55 }
 0xc98   : > { %v2439_v63 = vrot.slane %v2438_v39, 2 }
 0xc99   : > { %v2446_v44 = vrot.slane %v2445_v2, 2 }
 0xc9a   : > { %v2440_v49 = vadd.f32 %v2439_v63, %v2438_v39 }
 0xc9b   : > { %v2447_v52 = vadd.f32 %v2446_v44, %v2445_v2 }
 0xc9c   : > { %v2441_v56 = vrot.slane %v2440_v49, 1 }
 0xc9d   : > { %v2448_v21 = vrot.slane %v2447_v52, 1 }
 0xc9e   : > { %v2442_v33 = vadd.f32 %v2441_v56, %v2440_v49 }
 0xc9f   : > { %v2449_v16 = vadd.f32 %v2448_v21, %v2447_v52 }
 0xca0   : > { %v2591_v1 = vsel %vm696_vm6, %v2442_v33, %v2587_v37 }
 0xca1   : > { %v2592_v7 = vsel %vm696_vm6, %v2449_v16, %v2588_v22 }
 0xcad   : > { %v2488_v26 = vpop.xlane.xlu0 %2487 }
 0xcae   : > { %v2489_v58 = vrot.slane %v2488_v26, 4 }
 0xcb0   : > { %v2490_v59 = vadd.f32 %v2489_v58, %v2488_v26 }
 0xcb1   : > { %v2503_v0 = vpop.xlane.xlu0 %2502 }
 0xcb2   : > { %v2491_v5 = vrot.slane %v2490_v59, 2  ;;  %v2504_v9 = vrot.slane %v2503_v0, 4 }
 0xcb4   : > { %v2505_v11 = vadd.f32 %v2504_v9, %v2503_v0  ;;  %v2492_v28 = vadd.f32 %v2491_v5, %v2490_v59 }
 0xcb6   : > { %v2506_v13 = vrot.slane %v2505_v11, 2  ;;  %v2493_v30 = vrot.slane %v2492_v28, 1 }
 0xcb8   : > { %v2507_v31 = vadd.f32 %v2506_v13, %v2505_v11  ;;  %v2494_v46 = vadd.f32 %v2493_v30, %v2492_v28 }
 0xcba   : > { %3130 = vpush %v2494_v46  ;;  %v2547_v36 = vpop.xlane.xlu1 %2546  ;;  %v2508_v25 = vrot.slane %v2507_v31, 1 }
 0xcbb   : > { %v2548_v40 = vrot.slane %v2547_v36, 4 }
 0xcbc   : > { %v2509_v47 = vadd.f32 %v2508_v25, %v2507_v31 }
 0xcbd   : > { %v2549_v51 = vadd.f32 %v2548_v40, %v2547_v36 }
 0xcbe   : > { %3132 = vpush %v2509_v47 }
 0xcbf   : > { %v2550_v27 = vrot.slane %v2549_v51, 2 }
 0xcc1   : > { %v2551_v12 = vadd.f32 %v2550_v27, %v2549_v51 }
 0xcc3   : > { %v2552_v19 = vrot.slane %v2551_v12, 1 }
 0xcc5   : > { %v2553_v29 = vadd.f32 %v2552_v19, %v2551_v12 }
 0xcc7   : > { %3134 = vpush %v2553_v29 }
 0xceb   : > { %s3131_s28 = spop %3130 }
 0xcec   : > { %v2496_v45 = vstv %s3131_s28 }
 0xcef   : > { %s3133_s9 = spop %3132 }
 0xcf0   : > { %v2511_v43 = vstv %s3133_s9 }
 0xcf1   : > { %v2512_v3 = vadd.f32 %v2511_v43, %v2496_v45 }
 0xcf3   : > { %v2581_v8 = vmul.f32 %v2705_v61, %v2512_v3  ;;  %v2582_v10 = vmul.f32 0.0, %v2512_v3 }
 0xcf8   : > { %s3135_s11 = spop %3134 }
 0xcf9   : > { %v2570_v32 = vstv %s3135_s11 }
 0xcfa   : > { %v2571_v18 = vmul.f32 %v2704_v17, %v2570_v32  ;;  %v2572_v62 = vmul.f32 0.0, %v2570_v32 }
 0xcfc   : > { %v2573_v15 = vadd.f32 %v2571_v18, %v2562_v6  ;;  %v2574_v54 = vadd.f32 %v2572_v62, %v2563_v50 }
 0xcfe   : > { %v2583_v41 = vadd.f32 %v2581_v8, %v2573_v15  ;;  %v2584_v35 = vadd.f32 %v2582_v10, %v2574_v54 }
 0xd00   : > { %v2594_v53 = vsel %vm2593_vm13, %v2591_v1, %v2583_v41  ;;  %v2595_v42 = vsel %vm2593_vm13, %v2592_v7, %v2584_v35 }
 0xd01   : > { %v2598_v57 = vcombine.low %v2594_v53, %v2595_v42 }
 0xd03   : > { %2600 = vst [vmem:[%s251_s15] sm:$0xff] %v2598_v57 }
 0xd04 PF: > { %s16_s21 = sadd.s32 1, %s3165_s21  }
 0xd05   : > { %p13_p4 = scmp.ge.s32.totalorder %s16_s21, 4  }
 0xd07   :  { %15 = sbr.rel (!%p13_p4) target bundleno = 1 (0x1), region = 74 }

</bundles_post_ra>
